<compile_context>
chip_gen: v6e
topology: v6e:2x2x1
jax: 0.10.0
libtpu: 0.0.40
codegen_flags: <defaults>
</compile_context>

<pallas_src>
import math

import jax
import jax.numpy as jnp
from jax.experimental import pallas as pl
from jax.experimental.pallas import tpu as pltpu


# ----------------------------------------------------------------------------
# helpers
# ----------------------------------------------------------------------------
def _round_up(x, m):
    return ((x + m - 1) // m) * m


def _vmem_params():
    """Returns (vmem_limit_bytes, per-input-block byte budget)."""
    try:
        cap = int(pltpu.get_tpu_info().vmem_capacity_bytes)
    except Exception:
        cap = 64 * 1024 * 1024  # conservative fallback (v7x physical VMEM / TC)
    # leave ~16 MiB compiler/internal headroom; cap scoped limit at 96 MiB
    limit = min(max(cap - 16 * 1024 * 1024, cap // 2), 96 * 1024 * 1024)
    # double-buffered input dominates; output + f32 scratch are tiny
    budget = min(int(limit * 0.45), 32 * 1024 * 1024)
    return limit, budget


def _sublane_pack(itemsize):
    return {1: 32, 2: 16}.get(itemsize, 8)


def _fold_factor(M, D):
    """Largest power-of-2 f with f*D <= 512 and M % f == 0 (lane densification
    of the input + a wider, denser output store)."""
    f = 1
    while f * 2 * D <= 512 and M % (f * 2) == 0:
        f *= 2
    return f


def _pick_row_tile(n_rows, bytes_per_row, budget, pack, min_grid=4):
    """Row tile that fills `budget` bytes, pack-aligned, keeping >= min_grid
    parallel blocks when the problem is big enough (megacore)."""
    tm = max(1, budget // max(bytes_per_row, 1))
    if n_rows >= pack * min_grid:
        tm = min(tm, _round_up(pl.cdiv(n_rows, min_grid), pack))
    if tm >= n_rows:
        return n_rows                       # full extent (always legal)
    tm = max(pack, (tm // pack) * pack)
    return min(tm, n_rows)


_MAX_DK = 64 * 128   # cap unrolled lane-strip adds per k-step in chunked path


# ----------------------------------------------------------------------------
# Case 1: reduction over the LAST axis of a (M, D) view
# ----------------------------------------------------------------------------
def _row_mean_full_kernel(d_true):
    """Whole row fits in one block (fold == 1): reduce over lanes, store."""
    inv_d = 1.0 / float(d_true)

    def kernel(x_ref, o_ref):
        x = x_ref[...].astype(jnp.float32)                       # (tm, W)
        o_ref[...] = (jnp.sum(x, axis=-1, keepdims=True) * inv_d).astype(o_ref.dtype)

    return kernel


def _row_mean_fold_kernel(d_true):
    """Folded rows (W = fold*D <= 512): per-group sums via a 0/1-selector
    matmul on the otherwise idle MXU. Selector is a constant input."""
    inv_d = 1.0 / float(d_true)

    def kernel(sel_ref, x_ref, o_ref):
        x = x_ref[...].astype(jnp.float32)                       # (tm, W)
        s = jnp.dot(x, sel_ref[...],
                    precision=jax.lax.Precision.HIGHEST,
                    preferred_element_type=jnp.float32)          # (tm, fold)
        o_ref[...] = (s * inv_d).astype(o_ref.dtype)

    return kernel


def _row_mean_chunked_kernel(d_true, dk, needs_mask):
    """D tiled along the last grid axis; lane-dense (tm, 128) f32 accumulator.
    Inner loop is vld + VPU adds only; single XLU reduce + narrow store at the
    final k-step."""
    inv_d = 1.0 / float(d_true)
    n_strips = dk // 128

    def kernel(x_ref, o_ref, acc_ref):
        k = pl.program_id(1)

        @pl.when(k == 0)
        def _init():
            acc_ref[...] = jnp.zeros_like(acc_ref)

        x = x_ref[...].astype(jnp.float32)                       # (tm, dk)
        if needs_mask:
            col = jax.lax.broadcasted_iota(jnp.int32, x.shape, 1)
            x = jnp.where(k * dk + col < d_true, x, 0.0)

        acc = acc_ref[...]                                       # (tm, 128)
        for s in range(n_strips):                                # pure VPU adds
            acc = acc + x[:, s * 128:(s + 1) * 128]
        acc_ref[...] = acc

        @pl.when(k == pl.num_programs(1) - 1)
        def _store():
            total = jnp.sum(acc_ref[...], axis=-1, keepdims=True)  # one XLU reduce
            o_ref[...] = (total * inv_d).astype(o_ref.dtype)

    return kernel


def _mean_last_2d(x2d, *, block_budget_bytes=None):
    """Mean over the last axis of (M, D); returns (M, 1)."""
    M, D = map(int, x2d.shape)
    dtype = x2d.dtype
    itemsize = jnp.dtype(dtype).itemsize
    limit, budget = _vmem_params()
    if block_budget_bytes is not None:
        budget = int(block_budget_bytes)
    pack = _sublane_pack(itemsize)

    # Lane densification (free, contiguity-preserving reshape).
    fold = _fold_factor(M, D)
    Mr, W = M // fold, D * fold
    xk = x2d.reshape(Mr, W) if fold > 1 else x2d
    W_pad = _round_up(W, 128)

    cost = pl.CostEstimate(flops=2 * M * D, transcendentals=0,
                           bytes_accessed=M * D * itemsize + M * itemsize)

    min_rows = max(pack, min(256, Mr))
    full_w_fits = (fold > 1) or (W_pad * itemsize * min_rows <= budget)

    if full_w_fits:
        tm = _pick_row_tile(Mr, W_pad * itemsize, budget, pack)
        grid = (pl.cdiv(Mr, tm),)
        if fold > 1:
            # Grid-invariant selector built once in the wrapper.
            lane = jax.lax.broadcasted_iota(jnp.int32, (W, fold), 0)
            grp = jax.lax.broadcasted_iota(jnp.int32, (W, fold), 1)
            sel = ((lane // D) == grp).astype(jnp.float32)        # (W, fold) 0/1
            out2 = pl.pallas_call(
                _row_mean_fold_kernel(D),
                out_shape=jax.ShapeDtypeStruct((Mr, fold), dtype),
                grid_spec=pltpu.PrefetchScalarGridSpec(
                    num_scalar_prefetch=0,
                    grid=grid,
                    in_specs=[pl.BlockSpec((W, fold), lambda i: (0, 0)),
                              pl.BlockSpec((tm, W), lambda i: (i, 0))],
                    out_specs=pl.BlockSpec((tm, fold), lambda i: (i, 0)),
                ),
                compiler_params=pltpu.CompilerParams(
                    dimension_semantics=("parallel",),
                    vmem_limit_bytes=limit),
                cost_estimate=cost,
            )(sel, xk)
        else:
            out2 = pl.pallas_call(
                _row_mean_full_kernel(D),
                out_shape=jax.ShapeDtypeStruct((Mr, 1), dtype),
                grid_spec=pltpu.PrefetchScalarGridSpec(
                    num_scalar_prefetch=0,
                    grid=grid,
                    in_specs=[pl.BlockSpec((tm, W), lambda i: (i, 0))],
                    out_specs=pl.BlockSpec((tm, 1), lambda i: (i, 0)),
                ),
                compiler_params=pltpu.CompilerParams(
                    dimension_semantics=("parallel",),
                    vmem_limit_bytes=limit),
                cost_estimate=cost,
            )(xk)
    else:
        # D-chunked accumulation (fold == 1 here, so W == D).
        dk = (budget // (min_rows * itemsize) // 128) * 128
        dk = max(128, min(dk, _MAX_DK, W_pad))
        tm = _pick_row_tile(Mr, dk * itemsize, budget, pack)
        n_d = pl.cdiv(W, dk)
        needs_mask = (W % dk) != 0
        out2 = pl.pallas_call(
            _row_mean_chunked_kernel(D, dk, needs_mask),
            out_shape=jax.ShapeDtypeStruct((Mr, 1), dtype),
            grid_spec=pltpu.PrefetchScalarGridSpec(
                num_scalar_prefetch=0,
                grid=(pl.cdiv(Mr, tm), n_d),
                in_specs=[pl.BlockSpec((tm, dk), lambda i, k: (i, k))],
                out_specs=pl.BlockSpec((tm, 1), lambda i, k: (i, 0)),
                scratch_shapes=[pltpu.VMEM((tm, 128), jnp.float32)],
            ),
            compiler_params=pltpu.CompilerParams(
                dimension_semantics=("parallel", "arbitrary"),
                vmem_limit_bytes=limit),
            cost_estimate=cost,
        )(xk)

    return out2.reshape(M, 1)


# ----------------------------------------------------------------------------
# Case 2: reduction over a NON-last axis, viewed as (P, D, Q) (no HBM transpose)
# ----------------------------------------------------------------------------
def _mid_mean_kernel(d_true, td, needs_mask):
    inv_d = 1.0 / float(d_true)

    def kernel(x_ref, o_ref, acc_ref):
        d = pl.program_id(2)

        @pl.when(d == 0)
        def _init():
            acc_ref[...] = jnp.zeros_like(acc_ref)

        x = x_ref[...].astype(jnp.float32)                        # (tp, td, tq)
        if needs_mask:
            row = jax.lax.broadcasted_iota(jnp.int32, x.shape, 1)
            x = jnp.where(d * td + row < d_true, x, 0.0)
        acc_ref[...] += jnp.sum(x, axis=1)                        # (tp, tq)

        @pl.when(d == pl.num_programs(2) - 1)
        def _store():
            o_ref[...] = (acc_ref[...] * inv_d).astype(o_ref.dtype)

    return kernel


def _mean_mid_3d(x3):
    """Mean over the middle axis of (P, D, Q); returns (P, Q)."""
    P, D, Q = map(int, x3.shape)
    dtype = x3.dtype
    itemsize = jnp.dtype(dtype).itemsize
    limit, budget = _vmem_params()
    pack = _sublane_pack(itemsize)

    tq = Q if Q <= 2048 else 2048              # lane tile: full extent or x128
    td = D if D <= 512 else 512                # sublane (reduction) tile

    def blk_bytes(tp_, td_, tq_):
        return tp_ * _round_up(td_, pack) * _round_up(tq_, 128) * itemsize

    # make sure even a minimal (pack-row) block fits the budget
    while blk_bytes(pack, td, tq) > budget and tq > 128:
        tq = max(128, ((tq // 2) // 128) * 128)
    while blk_bytes(pack, td, tq) > budget and td > pack:
        td = max(pack, ((td // 2) // pack) * pack)

    needs_mask = (D % td) != 0
    tp = _pick_row_tile(P, blk_bytes(1, td, tq), budget, pack)

    cost = pl.CostEstimate(flops=P * D * Q, transcendentals=0,
                           bytes_accessed=P * D * Q * itemsize + P * Q * itemsize)

    return pl.pallas_call(
        _mid_mean_kernel(D, td, needs_mask),
        out_shape=jax.ShapeDtypeStruct((P, Q), dtype),
        grid_spec=pltpu.PrefetchScalarGridSpec(
            num_scalar_prefetch=0,
            grid=(pl.cdiv(P, tp), pl.cdiv(Q, tq), pl.cdiv(D, td)),
            in_specs=[pl.BlockSpec((tp, td, tq), lambda p, q, d: (p, d, q))],
            out_specs=pl.BlockSpec((tp, tq), lambda p, q, d: (p, q)),
            scratch_shapes=[pltpu.VMEM((tp, tq), jnp.float32)],
        ),
        compiler_params=pltpu.CompilerParams(
            dimension_semantics=("parallel", "parallel", "arbitrary"),
            vmem_limit_bytes=limit),
        cost_estimate=cost,
    )(x3)


# ----------------------------------------------------------------------------
# Public wrapper (matches EwLinear.forward semantics)
# ----------------------------------------------------------------------------
def ew_linear(x: jax.Array, dim: int = -1, keepdim: bool = True) -> jax.Array:
    """JAX/Pallas equivalent of EwLinear.forward: x.mean(dim, keepdim)."""
    ndim = x.ndim
    ax = dim % ndim
    shape = tuple(int(s) for s in x.shape)
    D = shape[ax]

    if ax == ndim - 1:
        lead = shape[:-1]
        M = math.prod(lead)
        out = _mean_last_2d(x.reshape(M, D)).reshape(lead + (1,))
    else:
        P = math.prod(shape[:ax])
        Q = math.prod(shape[ax + 1:])
        out = _mean_mid_3d(x.reshape(P, D, Q)).reshape(
            shape[:ax] + (1,) + shape[ax + 1:])

    if not keepdim:
        out = jnp.squeeze(out, axis=ax)
    return out


if __name__ == "__main__":
    key = jax.random.PRNGKey(0)
    x = jax.random.normal(key, (2, 4, 16, 16), dtype=jnp.float32)

    # Module defaults: dim=-1, keepdim=True  (folded lane-reduction path, D=16)
    y = ew_linear(x, dim=-1, keepdim=True)
    jax.block_until_ready(y)
    y_ref = jnp.mean(x, axis=-1, keepdims=True)
    assert y.shape == y_ref.shape == (2, 4, 16, 1)
    assert jnp.allclose(y, y_ref, atol=1e-5, rtol=1e-5)

    # Non-last dim: sublane-reduction path, no HBM transpose.
    y2 = ew_linear(x, dim=1, keepdim=True)
    jax.block_until_ready(y2)
    y2_ref = jnp.mean(x, axis=1, keepdims=True)
    assert y2.shape == y2_ref.shape == (2, 1, 16, 16)
    assert jnp.allclose(y2, y2_ref, atol=1e-5, rtol=1e-5)

    # keepdim=False branch.
    y3 = ew_linear(x, dim=-1, keepdim=False)
    jax.block_until_ready(y3)
    assert y3.shape == (2, 4, 16)
    assert jnp.allclose(y3, jnp.mean(x, axis=-1), atol=1e-5, rtol=1e-5)

    # Exercise the D-chunked lane-dense accumulator path (tiny block budget
    # forces dk=128, 3 k-steps, masked tail).
    x_wide = jax.random.normal(jax.random.PRNGKey(1), (8, 300), dtype=jnp.float32)
    y4 = _mean_last_2d(x_wide, block_budget_bytes=4096)
    jax.block_until_ready(y4)
    assert jnp.allclose(y4, jnp.mean(x_wide, axis=-1, keepdims=True),
                        atol=1e-5, rtol=1e-5)

    print("KERNEL_OK")
</pallas_src>

<mosaic_0001>
module attributes {stable_mosaic.version = 11 : i64} {
  func.func @kernel(%arg0: i32, %arg1: memref<512x32xf32, #tpu.memory_space<vmem>>, %arg2: memref<4x512xf32, #tpu.memory_space<vmem>>, %arg3: memref<4x32xf32, #tpu.memory_space<vmem>>) attributes {dimension_semantics = [#tpu.dimension_semantics<parallel>], iteration_bounds = array<i64: 1>, scalar_prefetch = 0 : i64, scratch_operands = 0 : i64, tpu.core_type = #tpu.core_type<tc>, window_params = [{pipeline_mode = #tpu.pipeline_mode<synchronous>, transform_indices = @transform_0, window_bounds = array<i64: 512, 32>}, {transform_indices = @transform_1, window_bounds = array<i64: 4, 512>}, {transform_indices = @transform_2, window_bounds = array<i64: 4, 32>}]} {
    %c0 = arith.constant 0 : index
    %c0_0 = arith.constant 0 : index
    %0 = vector.load %arg2[%c0, %c0_0] : memref<4x512xf32, #tpu.memory_space<vmem>>, vector<4x512xf32>
    %c0_1 = arith.constant 0 : index
    %c0_2 = arith.constant 0 : index
    %1 = vector.load %arg1[%c0_1, %c0_2] : memref<512x32xf32, #tpu.memory_space<vmem>>, vector<512x32xf32>
    %cst = arith.constant dense<0.000000e+00> : vector<4x32xf32>
    %2 = tpu.matmul %0, %1, %cst {dimension_numbers = #tpu.dot_dimension_numbers<[1], [0], [0], [1], [0, 0, 1, 1], [], []>, precision = #tpu.contract_precision<fp32>} : vector<4x512xf32>, vector<512x32xf32>, vector<4x32xf32> -> vector<4x32xf32>
    %cst_3 = arith.constant 6.250000e-02 : f32
    %3 = vector.broadcast %cst_3 : f32 to vector<4x32xf32>
    %4 = arith.mulf %2, %3 : vector<4x32xf32>
    %c0_4 = arith.constant 0 : index
    %c0_5 = arith.constant 0 : index
    %5 = vector.load %arg3[%c0_4, %c0_5] : memref<4x32xf32, #tpu.memory_space<vmem>>, vector<4x32xf32>
    tpu.vector_store %arg3[%c0_4, %c0_5], %4 {strides = array<i32>} : memref<4x32xf32, #tpu.memory_space<vmem>>, vector<4x32xf32>,
    return
  }
  func.func @transform_0(%arg0: i32) -> (i32, i32) {
    %c0_i32 = arith.constant 0 : i32
    %c0_i32_0 = arith.constant 0 : i32
    %c0_i32_1 = arith.constant 0 : i32
    return %c0_i32, %c0_i32_0 : i32, i32
  }
  func.func @transform_1(%arg0: i32) -> (i32, i32) {
    %c0_i32 = arith.constant 0 : i32
    %c0_i32_0 = arith.constant 0 : i32
    return %arg0, %c0_i32 : i32, i32
  }
  func.func @transform_2(%arg0: i32) -> (i32, i32) {
    %c0_i32 = arith.constant 0 : i32
    %c0_i32_0 = arith.constant 0 : i32
    return %arg0, %c0_i32 : i32, i32
  }
}

</mosaic_0001>

<bundles_post_ra>
// kernel: tpu_custom_call.1
= control target key start
LH: loop header
LB: loop body
LE: loop exit
PB: predicated region body
PF: predicated region fallthrough
CT: control target
= control target key end

     0   :  { %s3674_s0 = inlined_call_operand.vmem [shape: f32[512,32], index: 0, kind: input, shape index: {}]   ;;  %s3675_s1 = inlined_call_operand.vmem [shape: f32[4,512], index: 1, kind: input, shape index: {}]   ;;  %s3676_s2 = inlined_call_operand.hbm [shape: f32[4,32], index: 2, kind: output, shape index: {}]  }
   0x1   :  { %v45_v0 = vld [vmem:[%s3674_s0 + $0xf8] sm:$0xff]  ;;  %v44_v2 = vld [vmem:[%s3674_s0 + $0xf0] sm:$0xff]  ;;  %v43_v7 = vld [vmem:[%s3674_s0 + $0xe8] sm:$0xff] }
   0x2   :  { %v29_v1 = vld [vmem:[%s3674_s0 + $0x78] sm:$0xff]  ;;  %v2295_v3 = vand.u32 4294901760, %v45_v0  ;;  %v2299_v5 = vand.u32 4294901760, %v44_v2  ;;  %v28_v6 = vld [vmem:[%s3674_s0 + $0x70] sm:$0xff]  ;;  %v27_v8 = vld [vmem:[%s3674_s0 + $0x68] sm:$0xff]  ;;  %v2312_v10 = vand.u32 4294901760, %v43_v7 }
   0x3   :  { %v2297_v4 = vand.u32 4294901760, %v29_v1  ;;  %v2310_v9 = vand.u32 4294901760, %v28_v6  ;;  %v2314_v11 = vand.u32 4294901760, %v27_v8  ;;  %v42_v12 = vld [vmem:[%s3674_s0 + $0xe0] sm:$0xff]  ;;  %v41_v14 = vld [vmem:[%s3674_s0 + $0xd8] sm:$0xff]  ;;  %v2343_v20 = vld [vmem:[%s3674_s0 + $0xd0] sm:$0xff] }
   0x4   :  { %v26_v13 = vld [vmem:[%s3674_s0 + $0x60] sm:$0xff]  ;;  %1825 = vmatprep.subr.mxu0 %v2295_v3  ;;  %v2326_v15 = vand.u32 4294901760, %v42_v12  ;;  %v2330_v17 = vand.u32 4294901760, %v41_v14  ;;  %v2333_v18 = vsub.f32 %v45_v0, %v2295_v3  ;;  %v2338_v19 = vld [vmem:[%s3674_s0 + $0x58] sm:$0xff]  ;;  %v2348_v21 = vld [vmem:[%s3674_s0 + $0x50] sm:$0xff]  ;;  %v2358_v24 = vand.u32 4294901760, %v2343_v20 }
   0x5   :  { %v2328_v16 = vand.u32 4294901760, %v26_v13  ;;  %1826 = vmatpush3.msra.mxu0 %v2297_v4  ;;  %v2352_v22 = vand.u32 4294901760, %v2338_v19  ;;  %v2355_v23 = vsub.f32 %v29_v1, %v2297_v4  ;;  %v2361_v25 = vsub.f32 %v44_v2, %v2299_v5  ;;  %v2366_v26 = vld [vmem:[%s3674_s0 + $0xc8] sm:$0xff]  ;;  %v2376_v28 = vld [vmem:[%s3674_s0 + $0xc0] sm:$0xff]  ;;  %v2428_v46 = vld [vmem:[%s3674_s0 + $0xb8] sm:$0xff] }
   0x6   :  { %v2371_v27 = vld [vmem:[%s3674_s0 + $0x48] sm:$0xff]  ;;  %1827 = vmatprep.subr.mxu0 %v2299_v5  ;;  %v3690_v29 = vand.u32 4294901760, %v2333_v18  ;;  %v2381_v30 = vand.u32 4294901760, %v2348_v21  ;;  %v2384_v31 = vsub.f32 %v28_v6, %v2310_v9  ;;  %v2387_v32 = vand.u32 4294901760, %v2366_v26  ;;  %v2401_v37 = vld [vmem:[%s3674_s0 + $0x40] sm:$0xff]  ;;  %v2441_v51 = vld [vmem:[%s3674_s0 + $0x38] sm:$0xff] }
   0x7   :  { %1828 = vmatpush3.msra.mxu0 %v2310_v9  ;;  %v3689_v33 = vand.u32 4294901760, %v2355_v23  ;;  %v3687_v34 = vand.u32 4294901760, %v2361_v25  ;;  %v2393_v35 = vsub.f32 %v43_v7, %v2312_v10  ;;  %v2396_v36 = vand.u32 4294901760, %v2371_v27  ;;  %v2451_v56 = vld [vmem:[%s3674_s0 + $0xb0] sm:$0xff]  ;;  %v2481_v2 = vld [vmem:[%s3674_s0 + $0xa8] sm:$0xff] }
   0x8   :  { %3815 = vst [vmem:[#allocation5_spill] sm:$0xff] %v2381_v30  ;;  %3816 = vst [vmem:[#allocation6_spill] sm:$0xff] %v2387_v32  ;;  %1829 = vmatprep.subr.mxu0 %v2312_v10  ;;  %v312_v38 = vsub.f32 %v2333_v18, %v3690_v29  ;;  %v3686_v39 = vand.u32 4294901760, %v2384_v31  ;;  %v2409_v40 = vsub.f32 %v27_v8, %v2314_v11  ;;  %v2412_v41 = vand.u32 4294901760, %v2376_v28  ;;  %v2466_v61 = vld [vmem:[%s3674_s0 + $0x30] sm:$0xff] }
   0x9   :  { %3817 = vst [vmem:[#allocation7_spill] sm:$0xff] %v2396_v36  ;;  %1830 = vmatpush3.msra.mxu0 %v2314_v11  ;;  %v200_v42 = vsub.f32 %v2355_v23, %v3689_v33  ;;  %v319_v43 = vsub.f32 %v2361_v25, %v3687_v34  ;;  %v3684_v44 = vand.u32 4294901760, %v2393_v35  ;;  %v2423_v45 = vsub.f32 %v42_v12, %v2326_v15  ;;  %v2617_v33 = vld [vmem:[%s3674_s0 + $0x88] sm:$0xff] }
   0xa   :  { %3818 = vst [vmem:[#allocation8_spill] sm:$0xff] %v2412_v41  ;;  %1831 = vmatprep.subr.mxu0 %v2326_v15  ;;  %v313_v47 = vand.u32 4294901760, %v312_v38  ;;  %v207_v48 = vsub.f32 %v2384_v31, %v3686_v39  ;;  %v3682_v49 = vand.u32 4294901760, %v2409_v40  ;;  %v2436_v50 = vand.u32 4294901760, %v2401_v37 }
   0xb   :  { %1832 = vmatpush3.msra.mxu0 %v2328_v16  ;;  %v201_v52 = vand.u32 4294901760, %v200_v42  ;;  %v320_v53 = vand.u32 4294901760, %v319_v43  ;;  %v326_v54 = vsub.f32 %v2393_v35, %v3684_v44  ;;  %v3681_v55 = vand.u32 4294901760, %v2423_v45  ;;  %v2590_v44 = vld [vmem:[%s3674_s0 + $0x90] sm:$0xff] }
   0xc   :  { %3819 = vst [vmem:[#allocation9_spill] sm:$0xff] %v2436_v50  ;;  %1833 = vmatprep.subr.mxu0 %v2330_v17  ;;  %1860 = vmatprep.subr.mxu1 %v313_v47  ;;  %v208_v57 = vand.u32 4294901760, %v207_v48  ;;  %v214_v58 = vsub.f32 %v2409_v40, %v3682_v49  ;;  %v2458_v59 = vsub.f32 %v26_v13, %v2328_v16  ;;  %v2461_v60 = vand.u32 4294901760, %v2428_v46  ;;  %v2495_v13 = vld [vmem:[%s3674_s0 + $0x28] sm:$0xff]  ;;  %v2574_v49 = vld [vmem:[%s3674_s0 + $0x18] sm:$0xff] }
   0xd   :  { %1834 = vmatpush3.msra.mxu0 %v2352_v22  ;;  %1861 = vmatpush3.msra.mxu1 %v201_v52  ;;  %v327_v62 = vand.u32 4294901760, %v326_v54  ;;  %v333_v63 = vsub.f32 %v2423_v45, %v3681_v55  ;;  %v2473_v0 = vsub.f32 %v41_v14, %v2330_v17  ;;  %v2476_v1 = vand.u32 4294901760, %v2441_v51 }
   0xe   :  { %3820 = vst [vmem:[#allocation10_spill] sm:$0xff] %v2461_v60  ;;  %1835 = vmatprep.subr.mxu0 %v2358_v24  ;;  %1862 = vmatprep.subr.mxu1 %v320_v53  ;;  %v215_v6 = vand.u32 4294901760, %v214_v58  ;;  %v3679_v7 = vand.u32 4294901760, %v2458_v59  ;;  %v2487_v8 = vsub.f32 %v2338_v19, %v2352_v22  ;;  %v2490_v12 = vand.u32 4294901760, %v2451_v56 }
   0xf   :  { %3821 = vst [vmem:[#allocation11_spill] sm:$0xff] %v2476_v1  ;;  %1836 = vmatpush3.msra.mxu0 %v2381_v30  ;;  %1863 = vmatpush3.msra.mxu1 %v208_v57  ;;  %v334_v14 = vand.u32 4294901760, %v333_v63  ;;  %v3677_v38 = vand.u32 4294901760, %v2473_v0  ;;  %v2501_v42 = vsub.f32 %v2343_v20, %v2358_v24  ;;  %v2504_v19 = vand.u32 4294901760, %v2466_v61  ;;  %v2521_v20 = vld [vmem:[%s3674_s0 + $0xa0] sm:$0xff] }
  0x10   :  { %3822 = vst [vmem:[#allocation12_spill] sm:$0xff] %v2490_v12  ;;  %1837 = vmatprep.subr.mxu0 %v2387_v32  ;;  %1864 = vmatprep.subr.mxu1 %v327_v62  ;;  %v221_v43 = vsub.f32 %v2458_v59, %v3679_v7  ;;  %v3678_v47 = vand.u32 4294901760, %v2487_v8  ;;  %v2513_v48 = vsub.f32 %v2348_v21, %v2381_v30  ;;  %v2516_v52 = vand.u32 4294901760, %v2481_v2 }
  0x11   :  { %3823 = vst [vmem:[#allocation13_spill] sm:$0xff] %v2504_v19  ;;  %1838 = vmatpush3.msra.mxu0 %v2396_v36  ;;  %1865 = vmatpush3.msra.mxu1 %v215_v6  ;;  %v340_v53 = vsub.f32 %v2473_v0, %v3677_v38  ;;  %v3680_v54 = vand.u32 4294901760, %v2501_v42  ;;  %v2530_v21 = vsub.f32 %v2366_v26, %v2387_v32  ;;  %v2533_v57 = vand.u32 4294901760, %v2495_v13  ;;  %v2547_v26 = vld [vmem:[%s3674_s0 + $0x20] sm:$0xff] }
  0x12   :  { %3824 = vst [vmem:[#allocation14_spill] sm:$0xff] %v2516_v52  ;;  %1839 = vmatprep.subr.mxu0 %v2412_v41  ;;  %1866 = vmatprep.subr.mxu1 %v334_v14  ;;  %v222_v58 = vand.u32 4294901760, %v221_v43  ;;  %v228_v62 = vsub.f32 %v2487_v8, %v3678_v47  ;;  %v3683_v63 = vand.u32 4294901760, %v2513_v48  ;;  %v2542_v6 = vsub.f32 %v2371_v27, %v2396_v36  ;;  %v2560_v27 = vld [vmem:[%s3674_s0 + $0x98] sm:$0xff] }
  0x13   :  { %3825 = vst [vmem:[#allocation15_spill] sm:$0xff] %v2533_v57  ;;  %1840 = vmatpush3.msra.mxu0 %v2436_v50  ;;  %v341_v38 = vand.u32 4294901760, %v340_v53  ;;  %v347_v14 = vsub.f32 %v2501_v42, %v3680_v54  ;;  %v3685_v43 = vand.u32 4294901760, %v2530_v21  ;;  %v2555_v47 = vand.u32 4294901760, %v2521_v20 }
  0x14   :  { %1867 = vmatpush3.msra.mxu1 %v222_v58  ;;  %1841 = vmatprep.subr.mxu0 %v2461_v60  ;;  %v229_v7 = vand.u32 4294901760, %v228_v62  ;;  %v235_v53 = vsub.f32 %v2513_v48, %v3683_v63  ;;  %v3688_v54 = vand.u32 4294901760, %v2542_v6  ;;  %v2569_v55 = vsub.f32 %v2376_v28, %v2412_v41 }
  0x15   :  { %3826 = vst [vmem:[#allocation16_spill] sm:$0xff] %v2555_v47  ;;  %1868 = vmatprep.subr.mxu1 %v341_v38  ;;  %1842 = vmatpush3.msra.mxu0 %v2476_v1  ;;  %v348_v58 = vand.u32 4294901760, %v347_v14  ;;  %v354_v62 = vsub.f32 %v2530_v21, %v3685_v43  ;;  %v2581_v63 = vand.u32 4294901760, %v2547_v26  ;;  %v2585_v28 = vsub.f32 %v2401_v37, %v2436_v50  ;;  %v2603_v37 = vld [vmem:[%s3674_s0 + $0x10] sm:$0xff] }
  0x16   :  { %1869 = vmatpush3.msra.mxu1 %v229_v7  ;;  %1843 = vmatprep.subr.mxu0 %v2490_v12  ;;  %v236_v38 = vand.u32 4294901760, %v235_v53  ;;  %v242_v14 = vsub.f32 %v2542_v6, %v3688_v54  ;;  %v3693_v43 = vand.u32 4294901760, %v2569_v55  ;;  %v2598_v39 = vand.u32 4294901760, %v2560_v27 }
  0x17   :  { %3827 = vst [vmem:[#allocation17_spill] sm:$0xff] %v2581_v63  ;;  %1870 = vmatprep.subr.mxu1 %v348_v58  ;;  %1844 = vmatpush3.msra.mxu0 %v2504_v19  ;;  %v355_v7 = vand.u32 4294901760, %v354_v62  ;;  %v3694_v53 = vand.u32 4294901760, %v2585_v28  ;;  %v2609_v34 = vsub.f32 %v2428_v46, %v2461_v60  ;;  %v2612_v54 = vand.u32 4294901760, %v2574_v49 }
  0x18   :  { %3828 = vst [vmem:[#allocation18_spill] sm:$0xff] %v2598_v39 }
  0x19   :  { %3829 = vst [vmem:[#allocation19_spill] sm:$0xff] %v2612_v54 }
  0x1a   :  { %7 = vsyncpa [#allocation3], 0  ;;  %1871 = vmatpush3.msra.mxu1 %v236_v38  ;;  %1845 = vmatprep.subr.mxu0 %v2516_v52  ;;  %v243_v58 = vand.u32 4294901760, %v242_v14  ;;  %v361_v62 = vsub.f32 %v2569_v55, %v3693_v43  ;;  %v2625_v46 = vsub.f32 %v2441_v51, %v2476_v1  ;;  %v2628_v29 = vand.u32 4294901760, %v2590_v44  ;;  %v2645_v51 = vld [vmem:[%s3674_s0 + $0x8] sm:$0xff] }
  0x1b   :  { %1872 = vmatprep.subr.mxu1 %v355_v7  ;;  %1846 = vmatpush3.msra.mxu0 %v2533_v57  ;;  %v249_v38 = vsub.f32 %v2585_v28, %v3694_v53  ;;  %v2637_v60 = vsub.f32 %v2451_v56, %v2490_v12  ;;  %v2640_v43 = vand.u32 4294901760, %v2603_v37  ;;  %v2651_v14 = vsub.f32 %v2466_v61, %v2504_v19  ;;  %v2659_v12 = vld [vmem:[%s3674_s0 + $0x80] sm:$0xff] }
  0x1c   :  { %3830 = vst [vmem:[#allocation20_spill] sm:$0xff] %v2628_v29  ;;  %1873 = vmatpush3.msra.mxu1 %v243_v58  ;;  %1847 = vmatprep.subr.mxu0 %v2555_v47  ;;  %v362_v7 = vand.u32 4294901760, %v361_v62  ;;  %v2654_v56 = vand.u32 4294901760, %v2617_v33  ;;  %v3834_v1 = vand.u32 4294901760, %v2609_v34  ;;  %v2668_v61 = vsub.f32 %v2481_v2, %v2516_v52  ;;  %v2685_v2 = vld [vmem:[%s3674_s0] sm:$0xff] }
  0x1d   :  { %3831 = vst [vmem:[#allocation21_spill] sm:$0xff] %v2640_v43  ;;  %3832 = vst [vmem:[#allocation22_spill] sm:$0xff] %v2651_v14  ;;  %1848 = vmatpush3.msra.mxu0 %v2581_v63  ;;  %v250_v58 = vand.u32 4294901760, %v249_v38  ;;  %v3711_v53 = vand.u32 4294901760, %v2637_v60  ;;  %v3836_v19 = vand.u32 4294901760, %v2625_v46  ;;  %v2676_v38 = vand.u32 4294901760, %v2645_v51 }
  0x1e   :  { %3833 = vst [vmem:[#allocation23_spill] sm:$0xff] %v2654_v56  ;;  %v368_v62 = vsub.f32 %v2609_v34, %v3834_v1  ;;  %3835 = vst [vmem:[#allocation24_spill] sm:$0xff] %v2668_v61  ;;  %1874 = vmatprep.subr.mxu1 %v362_v7  ;;  %1849 = vmatprep.subr.mxu0 %v2598_v39  ;;  %v2680_v1 = vsub.f32 %v2495_v13, %v2533_v57  ;;  %v2693_v52 = vand.u32 4294901760, %v2659_v12  ;;  %v12_v13 = vld [vmem:[%s3675_s1] sm:$0xff]  ;;  %vm1809_vm0 = vcmask 257024  }
  0x1f   :  { %v256_v50 = vsub.f32 %v2625_v46, %v3836_v19  ;;  %3837 = vst [vmem:[#allocation25_spill] sm:$0xff] %v2676_v38  ;;  %1875 = vmatpush3.msra.mxu1 %v250_v58  ;;  %1850 = vmatpush3.msra.mxu0 %v2612_v54  ;;  %v375_v19 = vsub.f32 %v2637_v60, %v3711_v53  ;;  %v3838_v58 = vand.u32 4294901760, %v2651_v14  ;;  %v3839_v32 = vand.u32 4294901760, %v2668_v61 }
  0x20   :  { %v369_v7 = vand.u32 4294901760, %v368_v62  ;;  %1851 = vmatprep.subr.mxu0 %v2628_v29  ;;  %v2705_v53 = vsub.f32 %v2521_v20, %v2555_v47  ;;  %v2712_v30 = vand.u32 4294901760, %v2685_v2  ;;  %v3840_v20 = vand.u32 4294901760, %v2680_v1 }
  0x21   :  { %v257_v57 = vand.u32 4294901760, %v256_v50  ;;  %v263_v62 = vsub.f32 %v2651_v14, %v3838_v58  ;;  %v376_v41 = vand.u32 4294901760, %v375_v19  ;;  %1852 = vmatpush3.msra.mxu0 %v2640_v43  ;;  %v382_v50 = vsub.f32 %v2668_v61, %v3839_v32 }
  0x22   :  { %1876 = vmatprep.subr.mxu1 %v369_v7  ;;  %v2716_v58 = vsub.f32 %v2547_v26, %v2581_v63  ;;  %1853 = vmatprep.subr.mxu0 %v2654_v56  ;;  %v270_v7 = vsub.f32 %v2680_v1, %v3840_v20  ;;  %v3722_v19 = vand.u32 4294901760, %v2705_v53  ;;  %v80_v47 = vcombine.high %v12_v13, %v12_v13 }
  0x23   :  { %1877 = vmatpush3.msra.mxu1 %v257_v57  ;;  %v264_v36 = vand.u32 4294901760, %v263_v62  ;;  %v383_v32 = vand.u32 4294901760, %v382_v50  ;;  %1854 = vmatpush3.msra.mxu0 %v2676_v38  ;;  %v2725_v14 = vand.u32 4294901760, %v12_v13  ;;  %v2729_v57 = vsub.f32 %v2560_v27, %v2598_v39 }
  0x24   :  { %1878 = vmatprep.subr.mxu1 %v376_v41  ;;  %v3723_v61 = vand.u32 4294901760, %v2716_v58  ;;  %v271_v26 = vand.u32 4294901760, %v270_v7  ;;  %1855 = vmatprep.subr.mxu0 %v2693_v52  ;;  %v389_v62 = vsub.f32 %v2705_v53, %v3722_v19  ;;  %v2735_v41 = vand.u32 4294901760, %v80_v47 }
  0x25   :  { %3841 = vst [vmem:[#allocation26_spill] sm:$0xff] %v2725_v14  ;;  %1879 = vmatpush3.msra.mxu1 %v264_v36  ;;  %v2739_v50 = vsub.f32 %v2574_v49, %v2612_v54  ;;  %1856 = vmatpush3.msra.mxu0 %v2712_v30  ;;  %v2747_v20 = vsub.f32 %v12_v13, %v2725_v14  ;;  %v3843_v13 = vand.u32 4294901760, %v2729_v57 }
  0x26   :  { %3842 = vst [vmem:[#allocation27_spill] sm:$0xff] %v2735_v41  ;;  %1880 = vmatprep.subr.mxu1 %v383_v32  ;;  %v277_v36 = vsub.f32 %v2716_v58, %v3723_v61  ;;  %v2751_v7 = vsub.f32 %v2590_v44, %v2628_v29  ;;  %v390_v19 = vand.u32 4294901760, %v389_v62  ;;  %v2754_v49 = vsub.f32 %v80_v47, %v2735_v41 }
  0x27   :  { %1881 = vmatpush3.msra.mxu1 %v271_v26  ;;  %1895 = vmatprep.subr.mxu0 %v2333_v18  ;;  %v3728_v32 = vand.u32 4294901760, %v2739_v50  ;;  %v2760_v61 = vsub.f32 %v2603_v37, %v2640_v43  ;;  %v396_v54 = vsub.f32 %v2729_v57, %v3843_v13  ;;  %v3731_v44 = vand.u32 4294901760, %v2747_v20 }
  0x28   :  { %v278_v27 = vand.u32 4294901760, %v277_v36  ;;  %421 = vmatprep.mubr.f32.mxu1 %v2735_v41  ;;  %1882 = vmatprep.subr.mxu1 %v390_v19  ;;  %v2775_v36 = vsub.f32 %v2617_v33, %v2654_v56  ;;  %v3844_v19 = vand.u32 4294901760, %v2751_v7  ;;  %v2785_v41 = vsub.f32 %v2645_v51, %v2676_v38 }
  0x29   :  { %v284_v62 = vsub.f32 %v2739_v50, %v3728_v32  ;;  %v397_v13 = vand.u32 4294901760, %v396_v54  ;;  %v189_v26 = vsub.f32 %v2747_v20, %v3731_v44  ;;  %v3845_v32 = vand.u32 4294901760, %v2754_v49 }
  0x2a   :  { %1883 = vmatpush3.msra.mxu1 %v278_v27  ;;  %v403_v47 = vsub.f32 %v2751_v7, %v3844_v19  ;;  %v3846_v27 = vand.u32 4294901760, %v2760_v61  ;;  %v3741_v56 = vand.u32 4294901760, %v2775_v36  ;;  %v3740_v19 = vand.u32 4294901760, %v2785_v41 }
  0x2b   :  { %v183_v37 = vsub.f32 %v2754_v49, %v3845_v32  ;;  %v285_v33 = vand.u32 4294901760, %v284_v62  ;;  %1884 = vmatprep.subr.mxu1 %v397_v13  ;;  %v190_v44 = vand.u32 4294901760, %v189_v26  ;;  %v2797_v51 = vsub.f32 %v2659_v12, %v2693_v52 }
  0x2c   :  { %v291_v54 = vsub.f32 %v2760_v61, %v3846_v27  ;;  %v404_v43 = vand.u32 4294901760, %v403_v47  ;;  %v410_v32 = vsub.f32 %v2775_v36, %v3741_v56  ;;  %v2804_v62 = vsub.f32 %v2685_v2, %v2712_v30  ;;  %v3848_v2 = vld [vmem:[#allocation5_spill] sm:$0xff]  ;;  %v3850_v27 = vld [vmem:[#allocation6_spill] sm:$0xff]  ;;  %v3863_v56 = vld [vmem:[#allocation19_spill] sm:$0xff] }
  0x2d   :  { %v184_v38 = vand.u32 4294901760, %v183_v37  ;;  %1885 = vmatpush3.msra.mxu1 %v285_v33  ;;  %v298_v26 = vsub.f32 %v2785_v41, %v3740_v19  ;;  %v3739_v47 = vand.u32 4294901760, %v2797_v51  ;;  %v3862_v19 = vand.u32 4294901760, %v2333_v18 }
  0x2e   :  { %v292_v29 = vand.u32 4294901760, %v291_v54  ;;  %3847 = vst [vmem:[#allocation28_spill] sm:$0xff] %v2804_v62  ;;  %1886 = vmatprep.subr.mxu1 %v404_v43  ;;  %v411_v12 = vand.u32 4294901760, %v410_v32  ;;  %v3738_v37 = vand.u32 4294901760, %v2804_v62  ;;  %v3851_v54 = vld [vmem:[#allocation24_spill] sm:$0xff]  ;;  %v3852_v32 = vld [vmem:[#allocation7_spill] sm:$0xff] }
  0x2f   :  { %185 = vmatprep.mubr.f32.mxu0 %v184_v38  ;;  %v299_v13 = vand.u32 4294901760, %v298_v26  ;;  %v417_v33 = vsub.f32 %v2797_v51, %v3739_v47  ;;  %v3853_v26 = vld [vmem:[#allocation8_spill] sm:$0xff]  ;;  %v3870_v18 = vand.u32 4294901760, %v2393_v35 }
  0x30   :  { %1887 = vmatpush3.msra.mxu1 %v292_v29  ;;  %191 = vmatmul.mubr.f32.vlgmr.msra.gmra.mxu0 %v190_v44  ;;  %v305_v43 = vsub.f32 %v2804_v62, %v3738_v37  ;;  %v3849_v44 = vld [vmem:[#allocation22_spill] sm:$0xff]  ;;  %v3860_v37 = vld [vmem:[#allocation15_spill] sm:$0xff]  ;;  %v3861_v47 = vld [vmem:[#allocation16_spill] sm:$0xff] }
  0x31   :  { %1896 = vmatpush3.msra.mxu0 %v2355_v23  ;;  %1888 = vmatprep.subr.mxu1 %v411_v12  ;;  %v418_v29 = vand.u32 4294901760, %v417_v33  ;;  %v3854_v12 = vld [vmem:[#allocation9_spill] sm:$0xff]  ;;  %v3856_v33 = vld [vmem:[#allocation11_spill] sm:$0xff] }
  0x32   :  { %1897 = vmatprep.subr.mxu0 %v2361_v25  ;;  %1889 = vmatpush3.msra.mxu1 %v299_v13  ;;  %v306_v38 = vand.u32 4294901760, %v305_v43  ;;  %v3855_v13 = vld [vmem:[#allocation10_spill] sm:$0xff]  ;;  %v3857_v43 = vld [vmem:[#allocation12_spill] sm:$0xff] }
  0x33   :  { %1898 = vmatpush3.msra.mxu0 %v2384_v31  ;;  %558 = vmatprep.mubr.f32.mxu0 %v2754_v49 }
  0x34   :  { %1899 = vmatprep.subr.mxu0 %v2393_v35  ;;  %1890 = vmatprep.subr.mxu1 %v418_v29  ;;  %v3858_v29 = vld [vmem:[#allocation13_spill] sm:$0xff]  ;;  %v3876_v35 = vand.u32 4294901760, %v2747_v20 }
  0x35   :  { %1900 = vmatpush3.msra.mxu0 %v2409_v40  ;;  %1891 = vmatpush3.msra.mxu1 %v306_v38  ;;  %v3859_v38 = vld [vmem:[#allocation14_spill] sm:$0xff] }
  0x36   :  { %1901 = vmatprep.subr.mxu0 %v2423_v45  ;;  %423 = vmatmul.mubr.f32.vlgmr.msra.gmra.mxu1 %v2725_v14  ;;  %v3864_v14 = vand.u32 4294901760, %v2355_v23  ;;  %v3872_v23 = vand.u32 4294901760, %v2409_v40  ;;  %v3878_v40 = vand.u32 4294901760, %v2487_v8 }
  0x37   :  { %1902 = vmatpush3.msra.mxu0 %v2458_v59  ;;  %1930 = vmatprep.subr.mxu1 %v2295_v3 }
  0x38   :  { %1903 = vmatprep.subr.mxu0 %v2473_v0  ;;  %1931 = vmatpush3.msra.mxu1 %v2297_v4 }
  0x39   :  { %1904 = vmatpush3.msra.mxu0 %v2487_v8  ;;  %1932 = vmatprep.subr.mxu1 %v2299_v5  ;;  %v3883_v8 = vand.u32 4294901760, %v2569_v55 }
  0x3a   :  { %1905 = vmatprep.subr.mxu0 %v2501_v42  ;;  %1933 = vmatpush3.msra.mxu1 %v2310_v9 }
  0x3b   :  { %1906 = vmatpush3.msra.mxu0 %v2513_v48  ;;  %1934 = vmatprep.subr.mxu1 %v2312_v10 }
  0x3c   :  { %1907 = vmatprep.subr.mxu0 %v2530_v21  ;;  %1935 = vmatpush3.msra.mxu1 %v2314_v11 }
  0x3d   :  { %1908 = vmatpush3.msra.mxu0 %v2542_v6  ;;  %1936 = vmatprep.subr.mxu1 %v2326_v15 }
  0x3e   :  { %1909 = vmatprep.subr.mxu0 %v2569_v55  ;;  %1937 = vmatpush3.msra.mxu1 %v2328_v16  ;;  %v76_v55 = vld [vmem:[%s3674_s0 + $0x1f0] sm:$0xff] }
  0x3f   :  { %1910 = vmatpush3.msra.mxu0 %v2585_v28  ;;  %1938 = vmatprep.subr.mxu1 %v2330_v17 }
  0x40   :  { %1911 = vmatprep.subr.mxu0 %v2609_v34  ;;  %1939 = vmatpush3.msra.mxu1 %v2352_v22 }
  0x41   :  { %1912 = vmatpush3.msra.mxu0 %v2625_v46  ;;  %1940 = vmatprep.subr.mxu1 %v2358_v24 }
  0x42   :  { %1913 = vmatprep.subr.mxu0 %v2637_v60  ;;  %1941 = vmatpush3.msra.mxu1 %v3848_v2 }
  0x43   :  { %1914 = vmatpush3.msra.mxu0 %v3849_v44  ;;  %1942 = vmatprep.subr.mxu1 %v3850_v27 }
  0x44   :  { %1915 = vmatprep.subr.mxu0 %v3851_v54  ;;  %1943 = vmatpush3.msra.mxu1 %v3852_v32 }
  0x45   :  { %1916 = vmatpush3.msra.mxu0 %v2680_v1  ;;  %1944 = vmatprep.subr.mxu1 %v3853_v26 }
  0x46   :  { %1917 = vmatprep.subr.mxu0 %v2705_v53  ;;  %1945 = vmatpush3.msra.mxu1 %v3854_v12 }
  0x47   :  { %1918 = vmatpush3.msra.mxu0 %v2716_v58  ;;  %1946 = vmatprep.subr.mxu1 %v3855_v13 }
  0x48   :  { %1919 = vmatprep.subr.mxu0 %v2729_v57  ;;  %1947 = vmatpush3.msra.mxu1 %v3856_v33 }
  0x49   :  { %1920 = vmatpush3.msra.mxu0 %v2739_v50  ;;  %1948 = vmatprep.subr.mxu1 %v3857_v43 }
  0x4a   :  { %1921 = vmatprep.subr.mxu0 %v2751_v7  ;;  %1949 = vmatpush3.msra.mxu1 %v3858_v29 }
  0x4b   :  { %1922 = vmatpush3.msra.mxu0 %v2760_v61  ;;  %1950 = vmatprep.subr.mxu1 %v3859_v38 }
  0x4c   :  { %1923 = vmatprep.subr.mxu0 %v2775_v36  ;;  %1951 = vmatpush3.msra.mxu1 %v3860_v37  ;;  %v3865_v37 = vld [vmem:[#allocation20_spill] sm:$0xff] }
  0x4d   :  { %1924 = vmatpush3.msra.mxu0 %v2785_v41  ;;  %1952 = vmatprep.subr.mxu1 %v3861_v47  ;;  %v3866_v47 = vand.u32 4294901760, %v2361_v25  ;;  %v3873_v25 = vand.u32 4294901760, %v2423_v45  ;;  %v3879_v45 = vand.u32 4294901760, %v2501_v42 }
  0x4e   :  { %1925 = vmatprep.subr.mxu0 %v2797_v51  ;;  %1953 = vmatpush3.msra.mxu1 %v2581_v63  ;;  %v3867_v63 = vld [vmem:[#allocation21_spill] sm:$0xff] }
  0x4f   :  { %1926 = vmatpush3.msra.mxu0 %v2804_v62  ;;  %1954 = vmatprep.subr.mxu1 %v2598_v39  ;;  %v3868_v62 = vand.u32 4294901760, %v2384_v31  ;;  %v3869_v39 = vld [vmem:[#allocation23_spill] sm:$0xff]  ;;  %v3874_v31 = vand.u32 4294901760, %v2754_v49  ;;  %v58_v49 = vld [vmem:[%s3674_s0 + $0x160] sm:$0xff] }
  0x50   :  { %561 = vmatmul.mubr.f32.vlgmr.msra.gmra.mxu0 %v2747_v20  ;;  %1965 = vmatprep.subr.mxu0 %v3862_v19  ;;  %v3871_v19 = vld [vmem:[#allocation25_spill] sm:$0xff] }
  0x51   :  { %1955 = vmatpush3.msra.mxu1 %v3863_v56  ;;  %1966 = vmatpush3.msra.mxu0 %v3864_v14  ;;  %v3875_v14 = vand.u32 4294901760, %v2458_v59  ;;  %v3880_v59 = vand.u32 4294901760, %v2513_v48 }
  0x52   :  { %1956 = vmatprep.subr.mxu1 %v3865_v37  ;;  %1967 = vmatprep.subr.mxu0 %v3866_v47 }
  0x53   :  { %1957 = vmatpush3.msra.mxu1 %v3867_v63  ;;  %1968 = vmatpush3.msra.mxu0 %v3868_v62  ;;  %v3877_v62 = vand.u32 4294901760, %v2473_v0  ;;  %v3881_v0 = vand.u32 4294901760, %v2530_v21 }
  0x54   :  { %1958 = vmatprep.subr.mxu1 %v3869_v39  ;;  %1969 = vmatprep.subr.mxu0 %v3870_v18  ;;  %v73_v18 = vld [vmem:[%s3674_s0 + $0x1d8] sm:$0xff] }
  0x55   :  { %1959 = vmatpush3.msra.mxu1 %v3871_v19  ;;  %1970 = vmatpush3.msra.mxu0 %v3872_v23  ;;  %v3895_v23 = vand.u32 4294901760, %v2716_v58 }
  0x56   :  { %1960 = vmatprep.subr.mxu1 %v2693_v52  ;;  %1971 = vmatprep.subr.mxu0 %v3873_v25  ;;  %v3897_v25 = vand.u32 4294901760, %v2729_v57 }
  0x57   :  { %1961 = vmatpush3.msra.mxu1 %v2712_v30  ;;  %665 = vmatprep.mubr.f32.mxu1 %v3874_v31 }
  0x58   :  { %1972 = vmatpush3.msra.mxu0 %v3875_v14  ;;  %669 = vmatmul.mubr.f32.vlgmr.msra.gmra.mxu1 %v3876_v35  ;;  %v3898_v35 = vand.u32 4294901760, %v2739_v50 }
  0x59   :  { %1973 = vmatprep.subr.mxu0 %v3877_v62  ;;  %2000 = vmatprep.subr.mxu1 %v2295_v3  ;;  %v61_v3 = vld [vmem:[%s3674_s0 + $0x178] sm:$0xff]  ;;  %v72_v62 = vld [vmem:[%s3674_s0 + $0x1d0] sm:$0xff] }
  0x5a   :  { %1974 = vmatpush3.msra.mxu0 %v3878_v40  ;;  %2001 = vmatpush3.msra.mxu1 %v2297_v4  ;;  %v3882_v4 = vand.u32 4294901760, %v2542_v6  ;;  %v2936_v42 = vand.u32 4294901760, %v61_v3  ;;  %v3888_v6 = vand.u32 4294901760, %v3849_v44  ;;  %v3900_v40 = vand.u32 4294901760, %v2751_v7 }
  0x5b   :  { %1975 = vmatprep.subr.mxu0 %v3879_v45  ;;  %2002 = vmatprep.subr.mxu1 %v2299_v5  ;;  %v77_v5 = vld [vmem:[%s3674_s0 + $0x1f8] sm:$0xff] }
  0x5c   :  { %1976 = vmatpush3.msra.mxu0 %v3880_v59  ;;  %2003 = vmatpush3.msra.mxu1 %v2310_v9  ;;  %v60_v9 = vld [vmem:[%s3674_s0 + $0x170] sm:$0xff]  ;;  %v2941_v48 = vand.u32 4294901760, %v77_v5 }
  0x5d   :  { %1977 = vmatprep.subr.mxu0 %v3881_v0  ;;  %2004 = vmatprep.subr.mxu1 %v2312_v10  ;;  %v3884_v10 = vand.u32 4294901760, %v2585_v28  ;;  %v2946_v21 = vand.u32 4294901760, %v60_v9  ;;  %v2966_v28 = vand.u32 4294901760, %v76_v55 }
  0x5e   :  { %1978 = vmatpush3.msra.mxu0 %v3882_v4  ;;  %2005 = vmatpush3.msra.mxu1 %v2314_v11  ;;  %v3885_v11 = vand.u32 4294901760, %v2609_v34  ;;  %v3887_v34 = vand.u32 4294901760, %v2637_v60  ;;  %v74_v60 = vld [vmem:[%s3674_s0 + $0x1e0] sm:$0xff]  ;;  %v2983_v47 = vsub.f32 %v77_v5, %v2941_v48  ;;  %v3068_v5 = vand.u32 4294901760, %v72_v62 }
  0x5f   :  { %1979 = vmatprep.subr.mxu0 %v3883_v8  ;;  %2006 = vmatprep.subr.mxu1 %v2326_v15  ;;  %v3886_v15 = vand.u32 4294901760, %v2625_v46  ;;  %v2975_v46 = vsub.f32 %v60_v9, %v2946_v21 }
  0x60   :  { %1980 = vmatpush3.msra.mxu0 %v3884_v10  ;;  %2007 = vmatpush3.msra.mxu1 %v2328_v16  ;;  %v75_v16 = vld [vmem:[%s3674_s0 + $0x1e8] sm:$0xff]  ;;  %v3754_v58 = vand.u32 4294901760, %v2983_v47  ;;  %3905 = vst [vmem:[#allocation10_spill] sm:$0xff] %v3068_v5  ;;  %v3906_v10 = vand.u32 4294901760, %v2785_v41 }
  0x61   :  { %1981 = vmatprep.subr.mxu0 %v3885_v11  ;;  %2008 = vmatprep.subr.mxu1 %v2330_v17  ;;  %v59_v17 = vld [vmem:[%s3674_s0 + $0x168] sm:$0xff]  ;;  %v2977_v20 = vand.u32 4294901760, %v75_v16  ;;  %v3749_v31 = vand.u32 4294901760, %v2975_v46 }
  0x62   :  { %1982 = vmatpush3.msra.mxu0 %v3886_v15  ;;  %2009 = vmatpush3.msra.mxu1 %v2352_v22  ;;  %v2964_v22 = vsub.f32 %v61_v3, %v2936_v42  ;;  %v2988_v44 = vand.u32 4294901760, %v59_v17  ;;  %v71_v3 = vld [vmem:[%s3674_s0 + $0x1c8] sm:$0xff]  ;;  %v3066_v4 = vsub.f32 %v2983_v47, %v3754_v58  ;;  %v3909_v15 = vld [vmem:[#allocation16_spill] sm:$0xff] }
  0x63   :  { %1983 = vmatprep.subr.mxu0 %v3887_v34  ;;  %2010 = vmatprep.subr.mxu1 %v2358_v24  ;;  %v3889_v24 = vand.u32 4294901760, %v3851_v54  ;;  %3890 = vst [vmem:[#allocation5_spill] sm:$0xff] %v2977_v20  ;;  %v2993_v54 = vand.u32 4294901760, %v74_v60  ;;  %v3019_v14 = vsub.f32 %v75_v16, %v2977_v20  ;;  %v3073_v9 = vsub.f32 %v2975_v46, %v3749_v31  ;;  %v51_v58 = vld [vmem:[%s3674_s0 + $0x128] sm:$0xff] }
  0x64   :  { %1984 = vmatpush3.msra.mxu0 %v3888_v6  ;;  %2011 = vmatpush3.msra.mxu1 %v3848_v2  ;;  %v3891_v2 = vand.u32 4294901760, %v2680_v1  ;;  %3892 = vst [vmem:[#allocation22_spill] sm:$0xff] %v2988_v44  ;;  %v3001_v1 = vand.u32 4294901760, %v58_v49  ;;  %v3025_v57 = vsub.f32 %v59_v17, %v2988_v44  ;;  %v3089_v34 = vand.u32 4294901760, %v71_v3  ;;  %v54_v6 = vld [vmem:[%s3674_s0 + $0x140] sm:$0xff] }
  0x65   :  { %1985 = vmatprep.subr.mxu0 %v3889_v24  ;;  %2012 = vmatprep.subr.mxu1 %v3850_v27  ;;  %v3893_v27 = vand.u32 4294901760, %v2705_v53  ;;  %3894 = vst [vmem:[#allocation6_spill] sm:$0xff] %v2993_v54  ;;  %v57_v53 = vld [vmem:[%s3674_s0 + $0x158] sm:$0xff]  ;;  %v3038_v50 = vsub.f32 %v74_v60, %v2993_v54  ;;  %v3748_v8 = vand.u32 4294901760, %v3019_v14 }
  0x66   :  { %1986 = vmatpush3.msra.mxu0 %v3891_v2  ;;  %2013 = vmatpush3.msra.mxu1 %v3852_v32  ;;  %3896 = vst [vmem:[#allocation24_spill] sm:$0xff] %v3001_v1  ;;  %v3753_v32 = vand.u32 4294901760, %v2964_v22  ;;  %v3035_v45 = vand.u32 4294901760, %v57_v53  ;;  %v3044_v59 = vsub.f32 %v58_v49, %v3001_v1  ;;  %3910 = vst [vmem:[#allocation11_spill] sm:$0xff] %v3089_v34  ;;  %v3912_v60 = vld [vmem:[#allocation28_spill] sm:$0xff]  ;;  %v3914_v49 = vld [vmem:[#allocation27_spill] sm:$0xff] }
  0x67   :  { %1987 = vmatprep.subr.mxu0 %v3893_v27  ;;  %2014 = vmatprep.subr.mxu1 %v3853_v26  ;;  %v3008_v26 = vsub.f32 %v76_v55, %v2966_v28  ;;  %v3908_v55 = vand.u32 4294901760, %v2797_v51  ;;  %v3750_v41 = vand.u32 4294901760, %v3038_v50  ;;  %v53_v51 = vld [vmem:[%s3674_s0 + $0x138] sm:$0xff]  ;;  %v3913_v24 = vand.u32 4294901760, %v3912_v60  ;;  %v50_v2 = vld [vmem:[%s3674_s0 + $0x120] sm:$0xff] }
  0x68   :  { %1988 = vmatpush3.msra.mxu0 %v3895_v23  ;;  %2015 = vmatpush3.msra.mxu1 %v3854_v12  ;;  %v56_v12 = vld [vmem:[%s3674_s0 + $0x150] sm:$0xff]  ;;  %3901 = vst [vmem:[#allocation8_spill] sm:$0xff] %v3035_v45  ;;  %v3049_v7 = vsub.f32 %v2964_v22, %v3753_v32  ;;  %v3087_v16 = vsub.f32 %v57_v53, %v3035_v45  ;;  %v70_v23 = vld [vmem:[%s3674_s0 + $0x1c0] sm:$0xff]  ;;  %v3752_v53 = vand.u32 4294901760, %v3044_v59 }
  0x69   :  { %1989 = vmatprep.subr.mxu0 %v3897_v25  ;;  %2016 = vmatprep.subr.mxu1 %v3855_v13  ;;  %v3027_v13 = vand.u32 4294901760, %v73_v18  ;;  %v3052_v0 = vand.u32 4294901760, %v56_v12  ;;  %v3915_v25 = vld [vmem:[#allocation17_spill] sm:$0xff] }
  0x6a   :  { %1990 = vmatpush3.msra.mxu0 %v3898_v35  ;;  %2017 = vmatpush3.msra.mxu1 %v3856_v33  ;;  %v3902_v33 = vand.u32 4294901760, %v2760_v61  ;;  %v55_v61 = vld [vmem:[%s3674_s0 + $0x148] sm:$0xff] }
  0x6b   :  { %3899 = vst [vmem:[#allocation7_spill] sm:$0xff] %v3027_v13  ;;  %1991 = vmatprep.subr.mxu0 %v3900_v40  ;;  %2018 = vmatprep.subr.mxu1 %v3857_v43  ;;  %v3751_v43 = vand.u32 4294901760, %v3008_v26  ;;  %3903 = vst [vmem:[#allocation9_spill] sm:$0xff] %v3052_v0  ;;  %v3081_v11 = vsub.f32 %v73_v18, %v3027_v13  ;;  %v3091_v17 = vand.u32 4294901760, %v55_v61  ;;  %v3916_v35 = vld [vmem:[#allocation26_spill] sm:$0xff]  ;;  %v3230_v40 = vand.u32 4294901760, %v51_v58 }
  0x6c   :  { %1992 = vmatpush3.msra.mxu0 %v3902_v33  ;;  %2019 = vmatpush3.msra.mxu1 %v3858_v29  ;;  %v3904_v29 = vand.u32 4294901760, %v2775_v36  ;;  %v3907_v36 = vld [vmem:[#allocation15_spill] sm:$0xff]  ;;  %v3110_v18 = vsub.f32 %v56_v12, %v3052_v0 }
  0x6d   :  { %2020 = vmatprep.subr.mxu1 %v3859_v38  ;;  %v3747_v38 = vand.u32 4294901760, %v3025_v57  ;;  %3911 = vst [vmem:[#allocation12_spill] sm:$0xff] %v3091_v17  ;;  %835 = vmatprep.mubr.f32.mxu0 %v3914_v49  ;;  %v3107_v27 = vsub.f32 %v3008_v26, %v3751_v43  ;;  %v3128_v12 = vld [vmem:[%s3674_s0 + $0x1b8] sm:$0xff]  ;;  %v3755_v60 = vand.u32 4294901760, %v3081_v11  ;;  %v3176_v43 = vsub.f32 %v71_v3, %v3089_v34 }
  0x6e   :  { %1993 = vmatprep.subr.mxu0 %v3904_v29  ;;  %2021 = vmatpush3.msra.mxu1 %v3907_v36  ;;  %v3123_v29 = vsub.f32 %v3019_v14, %v3748_v8  ;;  %v3917_v36 = vld [vmem:[#allocation18_spill] sm:$0xff]  ;;  %v3756_v8 = vand.u32 4294901760, %v3087_v16  ;;  %v3170_v31 = vand.u32 4294901760, %v3128_v12  ;;  %3927 = vst [vmem:[#allocation28_spill] sm:$0xff] %v3230_v40 }
  0x6f   :  { %1994 = vmatpush3.msra.mxu0 %v3906_v10  ;;  %2022 = vmatprep.subr.mxu1 %v3909_v15  ;;  %v3131_v10 = vsub.f32 %v72_v62, %v3068_v5  ;;  %v3140_v15 = vand.u32 4294901760, %v54_v6  ;;  %v52_v62 = vld [vmem:[%s3674_s0 + $0x130] sm:$0xff] }
  0x70   :  { %1995 = vmatprep.subr.mxu0 %v3908_v55  ;;  %2023 = vmatpush3.msra.mxu1 %v3915_v25  ;;  %v3138_v55 = vsub.f32 %v3025_v57, %v3747_v38  ;;  %v3151_v25 = vsub.f32 %v55_v61, %v3091_v17  ;;  %v3158_v38 = vsub.f32 %v3038_v50, %v3750_v41  ;;  %v68_v41 = vld [vmem:[%s3674_s0 + $0x1b0] sm:$0xff] }
  0x71   :  { %1996 = vmatpush3.msra.mxu0 %v3913_v24  ;;  %2024 = vmatprep.subr.mxu1 %v3917_v36  ;;  %3918 = vst [vmem:[#allocation13_spill] sm:$0xff] %v3140_v15  ;;  %v3143_v24 = vand.u32 4294901760, %v53_v51  ;;  %v3153_v36 = vand.u32 4294901760, %v70_v23  ;;  %v3167_v61 = vsub.f32 %v3044_v59, %v3752_v53  ;;  %3922 = vst [vmem:[#allocation21_spill] sm:$0xff] %v3170_v31  ;;  %v3182_v53 = vand.u32 4294901760, %v52_v62 }
  0x72   :  { %837 = vmatmul.mubr.f32.vlgmr.msra.gmra.mxu0 %v3916_v35  ;;  %2035 = vmatprep.subr.mxu0 %v2941_v48  ;;  %3920 = vst [vmem:[#allocation19_spill] sm:$0xff] %v3151_v25  ;;  %v3192_v3 = vsub.f32 %v54_v6, %v3140_v15  ;;  %v3211_v6 = vsub.f32 %v3087_v16, %v3756_v8 }
  0x73   :  { %3919 = vst [vmem:[#allocation14_spill] sm:$0xff] %v3143_v24  ;;  %2025 = vmatpush3.msra.mxu1 %v3863_v56  ;;  %2036 = vmatpush3.msra.mxu0 %v2936_v42  ;;  %3921 = vst [vmem:[#allocation20_spill] sm:$0xff] %v3153_v36  ;;  %v1182_v56 = vand.u32 4294901760, %v3107_v27  ;;  %v3759_v27 = vand.u32 4294901760, %v3131_v10  ;;  %v3200_v33 = vsub.f32 %v53_v51, %v3143_v24  ;;  %v67_v51 = vld [vmem:[%s3674_s0 + $0x1a8] sm:$0xff] }
  0x74   :  { %2026 = vmatprep.subr.mxu1 %v3865_v37  ;;  %2037 = vmatprep.subr.mxu0 %v2966_v28  ;;  %3923 = vst [vmem:[#allocation23_spill] sm:$0xff] %v3182_v53  ;;  %3924 = vst [vmem:[#allocation25_spill] sm:$0xff] %v3192_v3  ;;  %v3197_v37 = vsub.f32 %v3081_v11, %v3755_v60  ;;  %v3213_v60 = vand.u32 4294901760, %v68_v41  ;;  %v3244_v8 = vsub.f32 %v52_v62, %v3182_v53 }
  0x75   :  { %2027 = vmatpush3.msra.mxu1 %v3867_v63  ;;  %2038 = vmatpush3.msra.mxu0 %v2946_v21  ;;  %v3219_v63 = vsub.f32 %v70_v23, %v3153_v36  ;;  %v66_v23 = vld [vmem:[%s3674_s0 + $0x1a0] sm:$0xff] }
  0x76   :  { %2028 = vmatprep.subr.mxu1 %v3869_v39  ;;  %2039 = vmatprep.subr.mxu0 %v2977_v20  ;;  %3925 = vst [vmem:[#allocation15_spill] sm:$0xff] %v3213_v60  ;;  %3928 = vst [vmem:[#allocation27_spill] sm:$0xff] %v3244_v8  ;;  %v3929_v39 = vand.u32 4294901760, %v3110_v18  ;;  %v3265_v20 = vand.u32 4294901760, %v66_v23 }
  0x77   :  { %2029 = vmatpush3.msra.mxu1 %v3871_v19  ;;  %2040 = vmatpush3.msra.mxu0 %v2988_v44  ;;  %3926 = vst [vmem:[#allocation16_spill] sm:$0xff] %v3219_v63  ;;  %v3224_v19 = vld [vmem:[%s3675_s1 + $0x8] sm:$0xff]  ;;  %v1091_v44 = vand.u32 4294901760, %v3211_v6 }
  0x78   :  { %2030 = vmatprep.subr.mxu1 %v2693_v52  ;;  %2041 = vmatprep.subr.mxu0 %v2993_v54  ;;  %v3241_v52 = vsub.f32 %v3131_v10, %v3759_v27  ;;  %v3249_v32 = vsub.f32 %v3110_v18, %v3929_v39  ;;  %v3251_v54 = vand.u32 4294901760, %v50_v2  ;;  %v81_v62 = vcombine.high %v3224_v19, %v3224_v19  ;;  %v49_v27 = vld [vmem:[%s3674_s0 + $0x118] sm:$0xff] }
  0x79   :  { %2031 = vmatpush3.msra.mxu1 %v2712_v30  ;;  %939 = vmatprep.mubr.f32.mxu1 %v3914_v49  ;;  %v1203_v30 = vand.u32 4294901760, %v3197_v37  ;;  %v3256_v49 = vand.u32 4294901760, %v67_v51  ;;  %v3932_v39 = vand.u32 4294901760, %v3066_v4  ;;  %v3270_v37 = vsub.f32 %v3128_v12, %v3170_v31 }
  0x7a   :  { %3930 = vst [vmem:[#allocation17_spill] sm:$0xff] %v3251_v54  ;;  %2042 = vmatpush3.msra.mxu0 %v3001_v1  ;;  %941 = vmatmul.mubr.f32.vlgmr.msra.gmra.mxu1 %v3916_v35  ;;  %v3934_v4 = vand.u32 4294901760, %v3176_v43  ;;  %v3935_v12 = vand.u32 4294901760, %v3151_v25  ;;  %v3302_v1 = vsub.f32 %v68_v41, %v3213_v60  ;;  %v48_v41 = vld [vmem:[%s3674_s0 + $0x110] sm:$0xff] }
  0x7b   :  { %3931 = vst [vmem:[#allocation26_spill] sm:$0xff] %v3256_v49  ;;  %2043 = vmatprep.subr.mxu0 %v3027_v13  ;;  %2070 = vmatprep.subr.mxu1 %v3932_v39  ;;  %v3933_v13 = vand.u32 4294901760, %v3049_v7  ;;  %v3284_v39 = vsub.f32 %v51_v58, %v3230_v40  ;;  %v3299_v58 = vsub.f32 %v50_v2, %v3251_v54  ;;  %v3938_v7 = vand.u32 4294901760, %v3192_v3 }
  0x7c   :  { %2044 = vmatpush3.msra.mxu0 %v3035_v45  ;;  %v3281_v6 = vsub.f32 %v3176_v43, %v3934_v4  ;;  %v3289_v35 = vsub.f32 %v3151_v25, %v3935_v12  ;;  %v65_v45 = vld [vmem:[%s3674_s0 + $0x198] sm:$0xff]  ;;  %v1098_v4 = vand.u32 4294901760, %v3249_v32  ;;  %v3937_v12 = vand.u32 4294901760, %v3073_v9  ;;  %v64_v32 = vld [vmem:[%s3674_s0 + $0x190] sm:$0xff] }
  0x7d   :  { %2071 = vmatpush3.msra.mxu1 %v3933_v13  ;;  %2045 = vmatprep.subr.mxu0 %v3068_v5  ;;  %v1210_v13 = vand.u32 4294901760, %v3241_v52  ;;  %3936 = vst [vmem:[#allocation18_spill] sm:$0xff] %v3299_v58  ;;  %v3310_v5 = vsub.f32 %v3192_v3, %v3938_v7  ;;  %v3321_v2 = vsub.f32 %v67_v51, %v3256_v49  ;;  %v3323_v9 = vand.u32 4294901760, %v81_v62  ;;  %v63_v3 = vld [vmem:[%s3674_s0 + $0x188] sm:$0xff] }
  0x7e   :  { %2072 = vmatprep.subr.mxu1 %v1182_v56  ;;  %2046 = vmatpush3.msra.mxu0 %v3052_v0  ;;  %v3312_v56 = vand.u32 4294901760, %v49_v27  ;;  %v3940_v52 = vand.u32 4294901760, %v3123_v29  ;;  %v3941_v7 = vand.u32 4294901760, %v3219_v63  ;;  %v3333_v0 = vand.u32 4294901760, %v65_v45 }
  0x7f   :  { %2073 = vmatpush3.msra.mxu1 %v3937_v12  ;;  %3939 = vst [vmem:[#allocation29_spill] sm:$0xff] %v3323_v9  ;;  %2047 = vmatprep.subr.mxu0 %v3089_v34  ;;  %v3337_v25 = vand.u32 4294901760, %v3224_v19  ;;  %v3943_v51 = vand.u32 4294901760, %v3138_v55  ;;  %v1217_v29 = vand.u32 4294901760, %v3281_v6  ;;  %v3944_v34 = vand.u32 4294901760, %v3200_v33 }
  0x80   :  { %2074 = vmatprep.subr.mxu1 %v3940_v52  ;;  %v3331_v12 = vsub.f32 %v3219_v63, %v3941_v7  ;;  %2048 = vmatpush3.msra.mxu0 %v3091_v17  ;;  %v1105_v52 = vand.u32 4294901760, %v3289_v35  ;;  %v3945_v55 = vand.u32 4294901760, %v3158_v38  ;;  %v3359_v6 = vand.u32 4294901760, %v48_v41 }
  0x81   :  { %3942 = vst [vmem:[#allocation30_spill] sm:$0xff] %v3337_v25  ;;  %2075 = vmatpush3.msra.mxu1 %v3943_v51  ;;  %v3347_v7 = vsub.f32 %v3200_v33, %v3944_v34  ;;  %2049 = vmatprep.subr.mxu0 %v3153_v36  ;;  %v3356_v51 = vand.u32 4294901760, %v64_v32  ;;  %v3362_v34 = vsub.f32 %v66_v23, %v3265_v20  ;;  %v3947_v63 = vand.u32 4294901760, %v3167_v61  ;;  %v62_v23 = vld [vmem:[%s3674_s0 + $0x180] sm:$0xff] }
  0x82   :  { %2076 = vmatprep.subr.mxu1 %v3945_v55  ;;  %2050 = vmatpush3.msra.mxu0 %v3140_v15  ;;  %v1112_v17 = vand.u32 4294901760, %v3310_v5  ;;  %v3369_v36 = vsub.f32 %v49_v27, %v3312_v56  ;;  %v47_v55 = vld [vmem:[%s3674_s0 + $0x108] sm:$0xff]  ;;  %v3376_v35 = vsub.f32 %v81_v62, %v3323_v9  ;;  %v1224_v61 = vand.u32 4294901760, %v3331_v12 }
  0x83   :  { %3946 = vst [vmem:[#allocation31_spill] sm:$0xff] %v3356_v51  ;;  %2077 = vmatpush3.msra.mxu1 %v3947_v63  ;;  %2051 = vmatprep.subr.mxu0 %v3170_v31  ;;  %v3948_v63 = vand.u32 4294901760, %v3270_v37  ;;  %v3383_v27 = vand.u32 4294901760, %v63_v3  ;;  %v3390_v38 = vsub.f32 %v3224_v19, %v3337_v25  ;;  %v3949_v62 = vand.u32 4294901760, %v3244_v8  ;;  %v46_v31 = vld [vmem:[%s3674_s0 + $0x100] sm:$0xff]  ;;  %s2270_s0 = smov [#allocation2]  }
  0x84   :  { %2078 = vmatprep.subr.mxu1 %v1203_v30  ;;  %2052 = vmatpush3.msra.mxu0 %v3143_v24  ;;  %v1119_v30 = vand.u32 4294901760, %v3347_v7  ;;  %v3402_v15 = vsub.f32 %v65_v45, %v3333_v0  ;;  %v3409_v7 = vsub.f32 %v48_v41, %v3359_v6  ;;  %v3951_v45 = vand.u32 4294901760, %v3321_v2  ;;  %s1817_s28 = sshll.u32 %s2270_s0, 4  ;;  %s1818_s28 = int_to_ptr.vmem [resolvable:$true] %s1817_s28 }
  0x85   :  { %v1230_v5 = vsub.f32 %v3270_v37, %v3948_v63  ;;  %2079 = vmatpush3.msra.mxu1 %v1091_v44  ;;  %v1125_v12 = vsub.f32 %v3244_v8, %v3949_v62  ;;  %2053 = vmatprep.subr.mxu0 %v3213_v60  ;;  %v3950_v44 = vand.u32 4294901760, %v3302_v1  ;;  %v3411_v62 = vand.u32 4294901760, %v47_v55  ;;  %s2248_s29 = scalar_lea.vmem %s1818_s28, 64  ;;  %p2253_p1 = scmp.lt.s32.totalorder %s1818_s28, %s1818_s28 }
  0x86   :  { %2080 = vmatprep.subr.mxu1 %v1210_v13  ;;  %2054 = vmatpush3.msra.mxu0 %v3182_v53  ;;  %v1244_v24 = vsub.f32 %v3321_v2, %v3951_v45  ;;  %v3418_v60 = vand.u32 4294901760, %v62_v23  ;;  %v3425_v8 = vand.u32 4294901760, %v46_v31  ;;  %v3800_v63 = vand.u32 4294901760, %v3299_v58  ;;  %p2249_p0 = scmp.ne.s32.totalorder %s1818_s28, %s2248_s29  ;;  %p2254_p2 = scmp.lt.s32.totalorder %s2248_s29, %s2248_s29 }
  0x87   :  { %v1237_v19 = vsub.f32 %v3302_v1, %v3950_v44  ;;  %2081 = vmatpush3.msra.mxu1 %v1098_v4  ;;  %v3422_v44 = vsub.f32 %v64_v32, %v3356_v51  ;;  %2055 = vmatprep.subr.mxu0 %v3256_v49  ;;  %v1231_v41 = vand.u32 4294901760, %v1230_v5  ;;  %v1126_v45 = vand.u32 4294901760, %v1125_v12 }
  0x88   :  { %2082 = vmatprep.subr.mxu1 %v1217_v29  ;;  %2056 = vmatpush3.msra.mxu0 %v3230_v40  ;;  %v3952_v53 = vand.u32 4294901760, %v3284_v39  ;;  %v3435_v49 = vsub.f32 %v63_v3, %v3383_v27  ;;  %v3439_v5 = vsub.f32 %v47_v55, %v3411_v62  ;;  %v3953_v4 = vand.u32 4294901760, %v3362_v34  ;;  %p2255_p3 = por %p2254_p2, %p2253_p1 }
  0x89   :  { %2083 = vmatpush3.msra.mxu1 %v1105_v52  ;;  %2057 = vmatprep.subr.mxu0 %v3265_v20  ;;  %v1238_v29 = vand.u32 4294901760, %v1237_v19  ;;  %v3803_v12 = vand.u32 4294901760, %v3369_v36  ;;  %v3954_v3 = vand.u32 4294901760, %v3376_v35  ;;  %v3451_v19 = vsub.f32 %v62_v23, %v3418_v60 }
  0x8a   :  { %v1132_v13 = vsub.f32 %v3284_v39, %v3952_v53  ;;  %2084 = vmatprep.subr.mxu1 %v1224_v61  ;;  %v1251_v52 = vsub.f32 %v3362_v34, %v3953_v4  ;;  %2058 = vmatpush3.msra.mxu0 %v3251_v54  ;;  %v1245_v53 = vand.u32 4294901760, %v1244_v24  ;;  %v3455_v55 = vsub.f32 %v46_v31, %v3425_v8  ;;  %p2256_p4 = pnand %p2255_p3, %p2249_p0 }
  0x8b   :  { %2085 = vmatpush3.msra.mxu1 %v1112_v17  ;;  %v1045_v32 = vsub.f32 %v3376_v35, %v3954_v3  ;;  %3955 = vst [vmem:[#allocation32_spill] sm:$0xff] %v3451_v19  ;;  %2059 = vmatprep.subr.mxu0 %v3333_v0  ;;  %v1139_v17 = vsub.f32 %v3299_v58, %v3800_v63  ;;  %v3957_v24 = vand.u32 4294901760, %v3390_v38  ;;  %v3958_v61 = vand.u32 4294901760, %v3402_v15 }
  0x8c   :  { %2086 = vmatprep.subr.mxu1 %v1231_v41  ;;  %3956 = vst [vmem:[#allocation33_spill] sm:$0xff] %v3455_v55  ;;  %2060 = vmatpush3.msra.mxu0 %v3312_v56  ;;  %v1133_v23 = vand.u32 4294901760, %v1132_v13  ;;  %v1252_v63 = vand.u32 4294901760, %v1251_v52  ;;  %v3959_v13 = vand.u32 4294901760, %v3422_v44  ;;  %v3805_v31 = vand.u32 4294901760, %v3451_v19 }
  0x8d   :  { %v1051_v4 = vsub.f32 %v3390_v38, %v3957_v24  ;;  %2087 = vmatpush3.msra.mxu1 %v1119_v30  ;;  %v1258_v41 = vsub.f32 %v3402_v15, %v3958_v61  ;;  %2061 = vmatprep.subr.mxu0 %v3356_v51  ;;  %v1146_v24 = vsub.f32 %v3369_v36, %v3803_v12  ;;  %v1046_v30 = vand.u32 4294901760, %v1045_v32 }
  0x8e   :  { %2088 = vmatprep.subr.mxu1 %v1238_v29  ;;  %2062 = vmatpush3.msra.mxu0 %v3359_v6  ;;  %v1265_v61 = vsub.f32 %v3422_v44, %v3959_v13  ;;  %v1140_v29 = vand.u32 4294901760, %v1139_v17  ;;  %v3960_v51 = vand.u32 4294901760, %v3409_v7  ;;  %v3804_v3 = vand.u32 4294901760, %v3455_v55 }
  0x8f   :  { %2089 = vmatpush3.msra.mxu1 %v1126_v45  ;;  %2063 = vmatprep.subr.mxu0 %v3383_v27  ;;  %v1052_v52 = vand.u32 4294901760, %v1051_v4  ;;  %v1259_v45 = vand.u32 4294901760, %v1258_v41  ;;  %v3961_v32 = vand.u32 4294901760, %v3435_v49  ;;  %v3962_v17 = vand.u32 4294901760, %v3439_v5 }
  0x90   :  { %2090 = vmatprep.subr.mxu1 %v1245_v53  ;;  %v1153_v12 = vsub.f32 %v3409_v7, %v3960_v51  ;;  %2064 = vmatpush3.msra.mxu0 %v3411_v62  ;;  %v1147_v53 = vand.u32 4294901760, %v1146_v24  ;;  %v1266_v51 = vand.u32 4294901760, %v1265_v61 }
  0x91   :  { %2091 = vmatpush3.msra.mxu1 %v1133_v23  ;;  %v1272_v13 = vsub.f32 %v3435_v49, %v3961_v32  ;;  %2065 = vmatprep.subr.mxu0 %v3418_v60  ;;  %v1160_v4 = vsub.f32 %v3439_v5, %v3962_v17  ;;  %v1279_v23 = vsub.f32 %v3451_v19, %v3805_v31  ;;  %v3966_v32 = vld [vmem:[#allocation16_spill] sm:$0xff]  ;;  %v3980_v31 = vld [vmem:[#allocation14_spill] sm:$0xff] }
  0x92   :  { %2092 = vmatprep.subr.mxu1 %v1252_v63  ;;  %2066 = vmatpush3.msra.mxu0 %v3425_v8  ;;  %v1154_v41 = vand.u32 4294901760, %v1153_v12  ;;  %v1167_v63 = vsub.f32 %v3455_v55, %v3804_v3  ;;  %v3969_v17 = vld [vmem:[#allocation24_spill] sm:$0xff]  ;;  %v3979_v3 = vld [vmem:[#allocation21_spill] sm:$0xff] }
  0x93   :  { %1047 = vmatprep.mubr.f32.mxu0 %v1046_v30  ;;  %2093 = vmatpush3.msra.mxu1 %v1140_v29  ;;  %v1273_v24 = vand.u32 4294901760, %v1272_v13  ;;  %v1161_v30 = vand.u32 4294901760, %v1160_v4  ;;  %v1280_v61 = vand.u32 4294901760, %v1279_v23  ;;  %v3963_v29 = vld [vmem:[#allocation5_spill] sm:$0xff]  ;;  %v3967_v13 = vld [vmem:[#allocation6_spill] sm:$0xff]  ;;  %v3970_v4 = vld [vmem:[#allocation7_spill] sm:$0xff] }
  0x94   :  { %1053 = vmatmul.mubr.f32.vlgmr.msra.gmra.mxu0 %v1052_v52  ;;  %2094 = vmatprep.subr.mxu1 %v1259_v45  ;;  %v1168_v12 = vand.u32 4294901760, %v1167_v63  ;;  %v3964_v52 = vld [vmem:[#allocation19_spill] sm:$0xff]  ;;  %v3965_v45 = vld [vmem:[#allocation22_spill] sm:$0xff]  ;;  %v3974_v63 = vld [vmem:[#allocation9_spill] sm:$0xff] }
  0x95   :  { %2105 = vmatprep.subr.mxu0 %v2983_v47  ;;  %2095 = vmatpush3.msra.mxu1 %v1147_v53  ;;  %v3968_v53 = vld [vmem:[#allocation25_spill] sm:$0xff]  ;;  %v3972_v23 = vld [vmem:[#allocation10_spill] sm:$0xff] }
  0x96   :  { %2106 = vmatpush3.msra.mxu0 %v2964_v22  ;;  %2096 = vmatprep.subr.mxu1 %v1266_v51  ;;  %v3971_v51 = vld [vmem:[#allocation8_spill] sm:$0xff] }
  0x97   :  { %2107 = vmatprep.subr.mxu0 %v3008_v26  ;;  %2097 = vmatpush3.msra.mxu1 %v1154_v41  ;;  %v3973_v41 = vld [vmem:[#allocation27_spill] sm:$0xff] }
  0x98   :  { %2108 = vmatpush3.msra.mxu0 %v2975_v46  ;;  %2098 = vmatprep.subr.mxu1 %v1273_v24  ;;  %v3975_v24 = vld [vmem:[#allocation11_spill] sm:$0xff] }
  0x99   :  { %2109 = vmatprep.subr.mxu0 %v3019_v14  ;;  %2099 = vmatpush3.msra.mxu1 %v1161_v30  ;;  %v3976_v30 = vld [vmem:[#allocation12_spill] sm:$0xff] }
  0x9a   :  { %2110 = vmatpush3.msra.mxu0 %v3025_v57  ;;  %2100 = vmatprep.subr.mxu1 %v1280_v61  ;;  %v3977_v61 = vld [vmem:[#allocation20_spill] sm:$0xff] }
  0x9b   :  { %2111 = vmatprep.subr.mxu0 %v3038_v50  ;;  %2101 = vmatpush3.msra.mxu1 %v1168_v12  ;;  %v3978_v12 = vld [vmem:[#allocation13_spill] sm:$0xff] }
  0x9c   :  { %1283 = vmatprep.mubr.f32.mxu1 %v3323_v9  ;;  %2112 = vmatpush3.msra.mxu0 %v3044_v59  ;;  %v3982_v9 = vld [vmem:[#allocation23_spill] sm:$0xff] }
  0x9d   :  { %1285 = vmatmul.mubr.f32.vlgmr.msra.gmra.mxu1 %v3337_v25  ;;  %2113 = vmatprep.subr.mxu0 %v3081_v11  ;;  %v3981_v25 = vld [vmem:[#allocation15_spill] sm:$0xff] }
  0x9e   :  { %2140 = vmatprep.subr.mxu1 %v2941_v48  ;;  %2114 = vmatpush3.msra.mxu0 %v3087_v16 }
  0x9f   :  { %2141 = vmatpush3.msra.mxu1 %v2936_v42  ;;  %2115 = vmatprep.subr.mxu0 %v3131_v10 }
  0xa0   :  { %2142 = vmatprep.subr.mxu1 %v2966_v28  ;;  %2116 = vmatpush3.msra.mxu0 %v3110_v18 }
  0xa1   :  { %2143 = vmatpush3.msra.mxu1 %v2946_v21  ;;  %2117 = vmatprep.subr.mxu0 %v3176_v43 }
  0xa2   :  { %2144 = vmatprep.subr.mxu1 %v3963_v29  ;;  %2118 = vmatpush3.msra.mxu0 %v3964_v52 }
  0xa3   :  { %2145 = vmatpush3.msra.mxu1 %v3965_v45  ;;  %2119 = vmatprep.subr.mxu0 %v3966_v32 }
  0xa4   :  { %2146 = vmatprep.subr.mxu1 %v3967_v13  ;;  %2120 = vmatpush3.msra.mxu0 %v3968_v53 }
  0xa5   :  { %2147 = vmatpush3.msra.mxu1 %v3969_v17  ;;  %2121 = vmatprep.subr.mxu0 %v3270_v37 }
  0xa6   :  { %2148 = vmatprep.subr.mxu1 %v3970_v4  ;;  %2122 = vmatpush3.msra.mxu0 %v3200_v33 }
  0xa7   :  { %2149 = vmatpush3.msra.mxu1 %v3971_v51  ;;  %2123 = vmatprep.subr.mxu0 %v3302_v1 }
  0xa8   :  { %2150 = vmatprep.subr.mxu1 %v3972_v23  ;;  %2124 = vmatpush3.msra.mxu0 %v3973_v41 }
  0xa9   :  { %2151 = vmatpush3.msra.mxu1 %v3974_v63  ;;  %2125 = vmatprep.subr.mxu0 %v3321_v2 }
  0xaa   :  { %2152 = vmatprep.subr.mxu1 %v3975_v24  ;;  %2126 = vmatpush3.msra.mxu0 %v3284_v39 }
  0xab   :  { %2153 = vmatpush3.msra.mxu1 %v3976_v30  ;;  %2127 = vmatprep.subr.mxu0 %v3362_v34 }
  0xac   :  { %2154 = vmatprep.subr.mxu1 %v3977_v61  ;;  %2128 = vmatpush3.msra.mxu0 %v3299_v58  ;;  %v3983_v58 = vld [vmem:[#allocation26_spill] sm:$0xff] }
  0xad   :  { %2155 = vmatpush3.msra.mxu1 %v3978_v12  ;;  %2129 = vmatprep.subr.mxu0 %v3402_v15 }
  0xae   :  { %2156 = vmatprep.subr.mxu1 %v3979_v3  ;;  %2130 = vmatpush3.msra.mxu0 %v3369_v36 }
  0xaf   :  { %2157 = vmatpush3.msra.mxu1 %v3980_v31  ;;  %2131 = vmatprep.subr.mxu0 %v3422_v44 }
  0xb0   :  { %2158 = vmatprep.subr.mxu1 %v3981_v25  ;;  %2132 = vmatpush3.msra.mxu0 %v3409_v7 }
  0xb1   :  { %2159 = vmatpush3.msra.mxu1 %v3982_v9  ;;  %2133 = vmatprep.subr.mxu0 %v3435_v49 }
  0xb2   :  { %2160 = vmatprep.subr.mxu1 %v3983_v58  ;;  %2134 = vmatpush3.msra.mxu0 %v3439_v5  ;;  %v3984_v58 = vand.u32 4294901760, %v2983_v47  ;;  %v3989_v47 = vand.u32 4294901760, %v3019_v14  ;;  %v3994_v14 = vand.u32 4294901760, %v3390_v38 }
  0xb3   :  { %2161 = vmatpush3.msra.mxu1 %v3230_v40  ;;  %2135 = vmatprep.subr.mxu0 %v3451_v19  ;;  %v3985_v40 = vand.u32 4294901760, %v2964_v22  ;;  %v3986_v19 = vld [vmem:[#allocation31_spill] sm:$0xff]  ;;  %v3990_v22 = vand.u32 4294901760, %v3025_v57  ;;  %v3996_v57 = vand.u32 4294901760, %v3087_v16  ;;  %v4005_v16 = vand.u32 4294901760, %v3302_v1 }
  0xb4   :  { %2162 = vmatprep.subr.mxu1 %v3265_v20  ;;  %2136 = vmatpush3.msra.mxu0 %v3455_v55  ;;  %v3987_v55 = vand.u32 4294901760, %v3008_v26  ;;  %v3991_v26 = vand.u32 4294901760, %v3038_v50  ;;  %v3997_v50 = vand.u32 4294901760, %v3131_v10  ;;  %v4007_v10 = vand.u32 4294901760, %v3321_v2 }
  0xb5   :  { %1420 = vmatprep.mubr.f32.mxu0 %v3376_v35  ;;  %2163 = vmatpush3.msra.mxu1 %v3251_v54  ;;  %v3988_v54 = vand.u32 4294901760, %v2975_v46  ;;  %v3992_v46 = vand.u32 4294901760, %v3376_v35  ;;  %v4009_v1 = vand.u32 4294901760, %v3362_v34  ;;  %v4012_v2 = vand.u32 4294901760, %v3402_v15 }
  0xb6   :  { %1423 = vmatmul.mubr.f32.vlgmr.msra.gmra.mxu0 %v3390_v38  ;;  %2164 = vmatprep.subr.mxu1 %v3333_v0  ;;  %v4014_v35 = vand.u32 4294901760, %v3422_v44  ;;  %v4015_v34 = vand.u32 4294901760, %v3409_v7  ;;  %v4016_v15 = vand.u32 4294901760, %v3435_v49  ;;  %v4017_v38 = vld [vmem:[#allocation26_spill] sm:$0xff] }
  0xb7   :  { %2175 = vmatprep.subr.mxu0 %v3984_v58  ;;  %2165 = vmatpush3.msra.mxu1 %v3312_v56  ;;  %v4026_v49 = vld [vmem:[#allocation30_spill] sm:$0xff] }
  0xb8   :  { %2176 = vmatpush3.msra.mxu0 %v3985_v40  ;;  %2166 = vmatprep.subr.mxu1 %v3986_v19  ;;  %v3995_v40 = vand.u32 4294901760, %v3081_v11  ;;  %v3999_v11 = vand.u32 4294901760, %v3176_v43  ;;  %v4004_v43 = vand.u32 4294901760, %v3200_v33  ;;  %v4008_v33 = vand.u32 4294901760, %v3284_v39 }
  0xb9   :  { %2177 = vmatprep.subr.mxu0 %v3987_v55  ;;  %2167 = vmatpush3.msra.mxu1 %v3359_v6  ;;  %v4013_v39 = vand.u32 4294901760, %v3369_v36  ;;  %v4018_v36 = vand.u32 4294901760, %v3439_v5  ;;  %v4019_v55 = vld [vmem:[#allocation28_spill] sm:$0xff] }
  0xba   :  { %2178 = vmatpush3.msra.mxu0 %v3988_v54  ;;  %2168 = vmatprep.subr.mxu1 %v3383_v27  ;;  %v3993_v54 = vand.u32 4294901760, %v3044_v59  ;;  %v3998_v59 = vand.u32 4294901760, %v3110_v18  ;;  %v4006_v18 = vand.u32 4294901760, %v3973_v41 }
  0xbb   :  { %2179 = vmatprep.subr.mxu0 %v3989_v47  ;;  %2169 = vmatpush3.msra.mxu1 %v3411_v62 }
  0xbc   :  { %2180 = vmatpush3.msra.mxu0 %v3990_v22  ;;  %2170 = vmatprep.subr.mxu1 %v3418_v60 }
  0xbd   :  { %2181 = vmatprep.subr.mxu0 %v3991_v26  ;;  %2171 = vmatpush3.msra.mxu1 %v3425_v8 }
  0xbe   :  { %1527 = vmatprep.mubr.f32.mxu1 %v3992_v46  ;;  %2182 = vmatpush3.msra.mxu0 %v3993_v54 }
  0xbf   :  { %1531 = vmatmul.mubr.f32.vlgmr.msra.gmra.mxu1 %v3994_v14  ;;  %2183 = vmatprep.subr.mxu0 %v3995_v40 }
  0xc0   :  { %2210 = vmatprep.subr.mxu1 %v2941_v48  ;;  %2184 = vmatpush3.msra.mxu0 %v3996_v57  ;;  %v4000_v48 = vand.u32 4294901760, %v3964_v52 }
  0xc1   :  { %2211 = vmatpush3.msra.mxu1 %v2936_v42  ;;  %2185 = vmatprep.subr.mxu0 %v3997_v50  ;;  %v4001_v42 = vand.u32 4294901760, %v3966_v32 }
  0xc2   :  { %2212 = vmatprep.subr.mxu1 %v2966_v28  ;;  %2186 = vmatpush3.msra.mxu0 %v3998_v59  ;;  %v4002_v28 = vand.u32 4294901760, %v3968_v53 }
  0xc3   :  { %2213 = vmatpush3.msra.mxu1 %v2946_v21  ;;  %2187 = vmatprep.subr.mxu0 %v3999_v11  ;;  %v4003_v21 = vand.u32 4294901760, %v3270_v37  ;;  %v4010_v37 = vld [vmem:[#allocation18_spill] sm:$0xff] }
  0xc4   :  { %2214 = vmatprep.subr.mxu1 %v3963_v29  ;;  %2188 = vmatpush3.msra.mxu0 %v4000_v48  ;;  %v4011_v58 = vand.u32 4294901760, %v4010_v37 }
  0xc5   :  { %2215 = vmatpush3.msra.mxu1 %v3965_v45  ;;  %2189 = vmatprep.subr.mxu0 %v4001_v42 }
  0xc6   :  { %2216 = vmatprep.subr.mxu1 %v3967_v13  ;;  %2190 = vmatpush3.msra.mxu0 %v4002_v28 }
  0xc7   :  { %2217 = vmatpush3.msra.mxu1 %v3969_v17  ;;  %2191 = vmatprep.subr.mxu0 %v4003_v21 }
  0xc8   :  { %2218 = vmatprep.subr.mxu1 %v3970_v4  ;;  %2192 = vmatpush3.msra.mxu0 %v4004_v43 }
  0xc9   :  { %2219 = vmatpush3.msra.mxu1 %v3971_v51  ;;  %2193 = vmatprep.subr.mxu0 %v4005_v16 }
  0xca   :  { %2220 = vmatprep.subr.mxu1 %v3972_v23  ;;  %2194 = vmatpush3.msra.mxu0 %v4006_v18 }
  0xcb   :  { %2221 = vmatpush3.msra.mxu1 %v3974_v63  ;;  %2195 = vmatprep.subr.mxu0 %v4007_v10 }
  0xcc   :  { %2222 = vmatprep.subr.mxu1 %v3975_v24  ;;  %2196 = vmatpush3.msra.mxu0 %v4008_v33 }
  0xcd   :  { %2223 = vmatpush3.msra.mxu1 %v3976_v30  ;;  %2197 = vmatprep.subr.mxu0 %v4009_v1 }
  0xce   :  { %2224 = vmatprep.subr.mxu1 %v3977_v61  ;;  %2198 = vmatpush3.msra.mxu0 %v4011_v58 }
  0xcf   :  { %2225 = vmatpush3.msra.mxu1 %v3978_v12  ;;  %2199 = vmatprep.subr.mxu0 %v4012_v2 }
  0xd0   :  { %2226 = vmatprep.subr.mxu1 %v3979_v3  ;;  %2200 = vmatpush3.msra.mxu0 %v4013_v39  ;;  %v4020_v3 = vld [vmem:[#allocation32_spill] sm:$0xff] }
  0xd1   :  { %2227 = vmatpush3.msra.mxu1 %v3980_v31  ;;  %2201 = vmatprep.subr.mxu0 %v4014_v35  ;;  %v4021_v44 = vand.u32 4294901760, %v4020_v3  ;;  %v4024_v31 = vld [vmem:[#allocation29_spill] sm:$0xff] }
  0xd2   :  { %2228 = vmatprep.subr.mxu1 %v3981_v25  ;;  %2202 = vmatpush3.msra.mxu0 %v4015_v34  ;;  %v4022_v25 = vld [vmem:[#allocation33_spill] sm:$0xff] }
  0xd3   :  { %2229 = vmatpush3.msra.mxu1 %v3982_v9  ;;  %2203 = vmatprep.subr.mxu0 %v4016_v15  ;;  %v4023_v7 = vand.u32 4294901760, %v4022_v25  ;;  %v4025_v9 = vld [vmem:[#allocation17_spill] sm:$0xff] }
  0xd4   :  { %2230 = vmatprep.subr.mxu1 %v4017_v38  ;;  %2204 = vmatpush3.msra.mxu0 %v4018_v36 }
  0xd5   :  { %2231 = vmatpush3.msra.mxu1 %v4019_v55  ;;  %2205 = vmatprep.subr.mxu0 %v4021_v44 }
  0xd6   :  { %2232 = vmatprep.subr.mxu1 %v3265_v20  ;;  %2206 = vmatpush3.msra.mxu0 %v4023_v7 }
  0xd7   :  { %1697 = vmatprep.mubr.f32.mxu0 %v4024_v31  ;;  %2233 = vmatpush3.msra.mxu1 %v4025_v9 }
  0xd8   :  { %1699 = vmatmul.mubr.f32.vlgmr.msra.gmra.mxu0 %v4026_v49  ;;  %2234 = vmatprep.subr.mxu1 %v3333_v0 }
  0xd9   :  { %1801 = vmatprep.mubr.f32.mxu1 %v4024_v31  ;;  %2235 = vmatpush3.msra.mxu1 %v3312_v56 }
  0xda   :  { %2236 = vmatprep.subr.mxu1 %v3986_v19 }
  0xdb   :  { %2237 = vmatpush3.msra.mxu1 %v3359_v6 }
  0xdc   :  { %2238 = vmatprep.subr.mxu1 %v3383_v27 }
  0xdd   :  { %2239 = vmatpush3.msra.mxu1 %v3411_v62 }
  0xde   :  { %2240 = vmatprep.subr.mxu1 %v3418_v60 }
  0xdf   :  { %2241 = vmatpush3.msra.mxu1 %v3425_v8 }
  0xe0   :  { %1803 = vmatmul.mubr.f32.vlgmr.msra.gmra.mxu1 %v4026_v49 }
  0xf0   :  { %v1857_v20 = vpop.f32.mrf.mxu0 }
  0xf2   :  { %v1858_v0 = vpop.f32.mrf.mxu0 }
  0xf3   :  { %v1859_v17 = vadd.f32 %v1858_v0, %v1857_v20 }
  0xf6   :  { %v1892_v5 = vpop.f32.mrf.mxu1 }
  0xf8   :  { %v1893_v52 = vpop.f32.mrf.mxu1 }
  0xf9   :  { %v1894_v53 = vadd.f32 %v1893_v52, %v1892_v5 }
  0xfb   :  { %v425_v51 = vadd.f32 %v1894_v53, %v1859_v17 }
 0x110   :  { %v1927_v29 = vpop.f32.mrf.mxu0 }
 0x112   :  { %v1928_v56 = vpop.f32.mrf.mxu0 }
 0x113   :  { %v1929_v60 = vadd.f32 %v1928_v56, %v1927_v29 }
 0x115   :  { %v563_v63 = vadd.f32 %v1929_v60, %v425_v51 }
 0x118   :  { %v1962_v45 = vpop.f32.mrf.mxu1 }
 0x11a   :  { %v1963_v32 = vpop.f32.mrf.mxu1 }
 0x11b   :  { %v1964_v23 = vadd.f32 %v1963_v32, %v1962_v45 }
 0x11d   :  { %v671_v61 = vadd.f32 %v1964_v23, %v563_v63 }
 0x132   :  { %v1997_v19 = vpop.f32.mrf.mxu0 }
 0x134   :  { %v1998_v6 = vpop.f32.mrf.mxu0 }
 0x135   :  { %v1999_v24 = vadd.f32 %v1998_v6, %v1997_v19 }
 0x137   :  { %v839_v26 = vadd.f32 %v1999_v24, %v671_v61 }
 0x13a   :  { %v2032_v13 = vpop.f32.mrf.mxu1 }
 0x13c   :  { %v2033_v62 = vpop.f32.mrf.mxu1 }
 0x13d   :  { %v2034_v12 = vadd.f32 %v2033_v62, %v2032_v13 }
 0x13f   :  { %v943_v14 = vadd.f32 %v2034_v12, %v839_v26 }
 0x154   :  { %v2067_v27 = vpop.f32.mrf.mxu0 }
 0x156   :  { %v2068_v4 = vpop.f32.mrf.mxu0 }
 0x157   :  { %v2069_v46 = vadd.f32 %v2068_v4, %v2067_v27 }
 0x159   :  { %v1055_v50 = vadd.f32 %v2069_v46, %v943_v14 }
 0x15d   :  { %v2102_v8 = vpop.f32.mrf.mxu1 }
 0x15f   :  { %v2103_v30 = vpop.f32.mrf.mxu1 }
 0x160   :  { %v2104_v40 = vadd.f32 %v2103_v30, %v2102_v8 }
 0x162   :  { %v1287_v48 = vadd.f32 %v2104_v40, %v1055_v50 }
 0x176   :  { %v2137_v41 = vpop.f32.mrf.mxu0 }
 0x178   :  { %v2138_v47 = vpop.f32.mrf.mxu0 }
 0x179   :  { %v2139_v59 = vadd.f32 %v2138_v47, %v2137_v41 }
 0x17b   :  { %v1425_v28 = vadd.f32 %v2139_v59, %v1287_v48 }
 0x17f   :  { %v2172_v22 = vpop.f32.mrf.mxu1 }
 0x181   :  { %v2173_v57 = vpop.f32.mrf.mxu1 }
 0x182   :  { %v2174_v42 = vadd.f32 %v2173_v57, %v2172_v22 }
 0x184   :  { %v1533_v16 = vadd.f32 %v2174_v42, %v1425_v28 }
 0x198   :  { %v2207_v54 = vpop.f32.mrf.mxu0 }
 0x19a   :  { %v2208_v11 = vpop.f32.mrf.mxu0 }
 0x19b   :  { %v2209_v21 = vadd.f32 %v2208_v11, %v2207_v54 }
 0x19d   :  { %v1701_v10 = vadd.f32 %v2209_v21, %v1533_v16 }
 0x1a0   :  { %v2242_v43 = vpop.f32.mrf.mxu1 }
 0x1a2   :  { %v2243_v18 = vpop.f32.mrf.mxu1 }
 0x1a3   :  { %v2244_v33 = vadd.f32 %v2243_v18, %v2242_v43 }
 0x1a5   :  { %v1805_v1 = vadd.f32 %v2244_v33, %v1701_v10 }
 0x1a7   :  { %v1808_v37 = vmul.f32 0.0625, %v1805_v1 }
 0x1a9   :  { %1810 = vst.msk [vmem:[#allocation2] sm:$0xf] %vm1809_vm0, %v1808_v37 }
 0x1aa   :  { %2259 = shalt.err (!%p2256_p4)
}
 0x1ab   :  { %1820 = dma.vmem_to_hbm [thread:$0]  %s1818_s28, 64, %s3676_s2, [#allocation3]  }
 0x1ac   :  { %2268 = dma.done.wait [#allocation3], 64  }
 0x1ad   :  { %2269 = vsyncadd [#allocation3], 4294967232 }
 0x1ae   :  { %1824 = vsyncpa [#allocation3], 1 }

</bundles_post_ra>
